<compile_context>
chip_gen: v7x
topology: tpu7x:2x2x1
jax: 0.10.0
libtpu: 0.0.40
codegen_flags: <defaults>
</compile_context>

<pallas_src>
import random as pyrandom

import numpy as np
import jax
import jax.numpy as jnp
from jax.experimental import pallas as pl
from jax.experimental.pallas import tpu as pltpu

# ---- small, shape-consistent hyperparameters ----
SRC_LEN = 8      # encoder input length
TRG_LEN = 8      # decoder target length
BATCH   = 4
EMB     = 32     # embeddings_dim (encoder & decoder)
HID     = 32     # hidden_Dimention (encoder & decoder)
V_SRC   = 16     # source vocab (pretrained embedding rows)
V_TRG   = 16     # word_in_target
TF_RATIO = 0.25


# ----------------------------------------------------------------------------
# Fused Seq2Seq kernel: encoder recurrence + greedy/teacher-forced decode loop.
# No grid — everything lives in vregs; one dense store per output at the end.
# ----------------------------------------------------------------------------
def seq2seq_kernel(tf_ref, gt_ref, enc_xg_ref, enc_whh_ref, enc_b_ref,
                   dec_xt_ref, dec_whh_ref, dec_b_ref, wfc_ref, bfc_ref,
                   out_ref, pred_ref):
    B = gt_ref.shape[0]
    V = dec_xt_ref.shape[0]

    def lstm_step(x_gates, h, c, whh, b):
        # x_gates already holds x @ W_ih^T (hoisted off the serial path).
        gates = x_gates + jnp.dot(h, whh, preferred_element_type=jnp.float32) + b
        i_g = jax.nn.sigmoid(gates[:, 0 * HID:1 * HID])
        f_g = jax.nn.sigmoid(gates[:, 1 * HID:2 * HID])
        g_g = jnp.tanh(gates[:, 2 * HID:3 * HID])
        o_g = jax.nn.sigmoid(gates[:, 3 * HID:4 * HID])
        c_new = f_g * c + i_g * g_g
        h_new = o_g * jnp.tanh(c_new)
        return h_new, c_new

    # ------------------ encoder (fully unrolled) ------------------
    h = jnp.zeros((B, HID), jnp.float32)
    c = jnp.zeros((B, HID), jnp.float32)
    enc_whh = enc_whh_ref[...]
    enc_b = enc_b_ref[...]
    for t in range(SRC_LEN):
        xg = enc_xg_ref[t * B:(t + 1) * B, :]          # [B, 4H], precomputed x-proj
        h, c = lstm_step(xg, h, c, enc_whh, enc_b)

    # ------------------ decoder (fully unrolled) ------------------
    dec_xt = dec_xt_ref[...]                            # [V, 4H] = relu(emb) @ W_ih^T
    dec_whh = dec_whh_ref[...]
    dec_b = dec_b_ref[...]
    wfc = wfc_ref[...]
    bfc = bfc_ref[...]
    col_v = jax.lax.broadcasted_iota(jnp.int32, (B, V), 1)

    tok = gt_ref[:, 0:1]                                # input = ground_truth[0, :]
    logits_chunks = [jnp.zeros((B, V), jnp.float32)]    # t = 0 stays zero (PyTorch loop starts at 1)
    pred_chunks = [jnp.zeros((B, 1), jnp.float32)]
    for t in range(1, TRG_LEN):
        onehot = (col_v == tok).astype(jnp.float32)                       # [B, V]
        xg = jnp.dot(onehot, dec_xt, preferred_element_type=jnp.float32)  # fused emb+relu+proj
        h, c = lstm_step(xg, h, c, dec_whh, dec_b)
        logits = jnp.dot(h, wfc, preferred_element_type=jnp.float32) + bfc  # [B, V]

        # argmax along vocab (first occurrence of the max)
        mx = jnp.max(logits, axis=1, keepdims=True)
        idx = jnp.where(logits == mx, col_v, V)
        pred_idx = jnp.min(idx, axis=1, keepdims=True)                    # [B, 1] int32

        logits_chunks.append(logits)
        pred_chunks.append(pred_idx.astype(jnp.float32))

        # teacher forcing: next input = ground_truth[t] or argmax prediction
        tf = tf_ref[t]
        gt_col = gt_ref[:, t:t + 1]
        tok = jnp.where(tf > 0, gt_col, pred_idx)

    # single lane-dense stores: [B, TRG_LEN*V] = [4, 128] and [B, TRG_LEN] = [4, 8]
    out_ref[...] = jnp.concatenate(logits_chunks, axis=1)
    pred_ref[...] = jnp.concatenate(pred_chunks, axis=1)


# ----------------------------------------------------------------------------
# Wrapper (one device program under jit: table prep + gather + fused kernel)
# ----------------------------------------------------------------------------
@jax.jit
def seq2seq_forward(params, src_ids, ground_truth, tf_flags):
    # Encoder: fold embedding gather + input projection into one table, then gather.
    enc_x_table = jnp.dot(params["emb_src"], params["enc_wih_t"],
                          preferred_element_type=jnp.float32)         # [V_SRC, 4H]
    enc_xg = enc_x_table[src_ids].reshape(SRC_LEN * BATCH, 4 * HID)   # [SRC_LEN*B, 4H]

    # Decoder: fold embedding + relu + input projection into one table (exact).
    dec_x_table = jnp.dot(jnp.maximum(params["emb_trg"], 0.0), params["dec_wih_t"],
                          preferred_element_type=jnp.float32)         # [V_TRG, 4H]

    gt_bt = ground_truth.astype(jnp.int32).T                          # [B, TRG_LEN]

    out_flat, pred_flat = pl.pallas_call(
        seq2seq_kernel,
        out_shape=(jax.ShapeDtypeStruct((BATCH, TRG_LEN * V_TRG), jnp.float32),
                   jax.ShapeDtypeStruct((BATCH, TRG_LEN), jnp.float32)),
        in_specs=[
            pl.BlockSpec(memory_space=pltpu.MemorySpace.SMEM),   # teacher-force flags
            pl.BlockSpec(memory_space=pltpu.MemorySpace.VMEM),   # ground truth ids [B, T]
            pl.BlockSpec(memory_space=pltpu.MemorySpace.VMEM),   # encoder x-proj [S*B, 4H]
            pl.BlockSpec(memory_space=pltpu.MemorySpace.VMEM),   # enc W_hh^T
            pl.BlockSpec(memory_space=pltpu.MemorySpace.VMEM),   # enc bias
            pl.BlockSpec(memory_space=pltpu.MemorySpace.VMEM),   # dec relu(emb)@W_ih^T table
            pl.BlockSpec(memory_space=pltpu.MemorySpace.VMEM),   # dec W_hh^T
            pl.BlockSpec(memory_space=pltpu.MemorySpace.VMEM),   # dec bias
            pl.BlockSpec(memory_space=pltpu.MemorySpace.VMEM),   # fc W^T
            pl.BlockSpec(memory_space=pltpu.MemorySpace.VMEM),   # fc bias
        ],
        out_specs=(pl.BlockSpec(memory_space=pltpu.MemorySpace.VMEM),
                   pl.BlockSpec(memory_space=pltpu.MemorySpace.VMEM)),
    )(tf_flags, gt_bt, enc_xg, params["enc_whh_t"], params["enc_b"],
      dec_x_table, params["dec_whh_t"], params["dec_b"],
      params["fc_w_t"], params["fc_b"])

    # layout plumbing back to the PyTorch shapes
    dec_out = out_flat.reshape(BATCH, TRG_LEN, V_TRG).transpose(1, 0, 2)  # [T, B, V]
    predicted = pred_flat.T                                               # [T, B] float32
    return dec_out, predicted


# ----------------------------------------------------------------------------
# Pure-JAX/NumPy reference (unfused path, for correctness check)
# ----------------------------------------------------------------------------
def _lstm_cell_ref(x, h, c, wih_t, whh_t, b):
    gates = x @ wih_t + h @ whh_t + b
    i = jax.nn.sigmoid(gates[:, 0 * HID:1 * HID])
    f = jax.nn.sigmoid(gates[:, 1 * HID:2 * HID])
    g = jnp.tanh(gates[:, 2 * HID:3 * HID])
    o = jax.nn.sigmoid(gates[:, 3 * HID:4 * HID])
    c2 = f * c + i * g
    return o * jnp.tanh(c2), c2


def seq2seq_reference(params, src_ids, ground_truth, tf_flags):
    src_ids = np.asarray(src_ids)
    gt = np.asarray(ground_truth)
    tf_flags = np.asarray(tf_flags)
    h = jnp.zeros((BATCH, HID), jnp.float32)
    c = jnp.zeros((BATCH, HID), jnp.float32)
    for t in range(SRC_LEN):
        x = params["emb_src"][src_ids[t]]
        h, c = _lstm_cell_ref(x, h, c, params["enc_wih_t"],
                              params["enc_whh_t"], params["enc_b"])
    dec_out = np.zeros((TRG_LEN, BATCH, V_TRG), np.float32)
    predicted = np.zeros((TRG_LEN, BATCH), np.float32)
    inp = gt[0].astype(np.int32)
    for t in range(1, TRG_LEN):
        emb = jnp.maximum(params["emb_trg"][inp], 0.0)
        h, c = _lstm_cell_ref(emb, h, c, params["dec_wih_t"],
                              params["dec_whh_t"], params["dec_b"])
        logits = h @ params["fc_w_t"] + params["fc_b"]
        dec_out[t] = np.asarray(logits)
        pred = np.argmax(np.asarray(logits), axis=1)
        predicted[t] = pred.astype(np.float32)
        inp = gt[t].astype(np.int32) if tf_flags[t] > 0 else pred.astype(np.int32)
    return dec_out, predicted


# ----------------------------------------------------------------------------
# Main
# ----------------------------------------------------------------------------
if __name__ == "__main__":
    key = jax.random.PRNGKey(0)
    ks = jax.random.split(key, 14)

    def init(k, shape, scale=0.1):
        return jax.random.normal(k, shape, dtype=jnp.float32) * scale

    params = {
        "emb_src":   init(ks[0], (V_SRC, EMB)),
        "enc_wih_t": init(ks[1], (EMB, 4 * HID)),
        "enc_whh_t": init(ks[2], (HID, 4 * HID)),
        "enc_b":     init(ks[3], (1, 4 * HID)),     # b_ih + b_hh combined
        "emb_trg":   init(ks[4], (V_TRG, EMB)),
        "dec_wih_t": init(ks[5], (EMB, 4 * HID)),
        "dec_whh_t": init(ks[6], (HID, 4 * HID)),
        "dec_b":     init(ks[7], (1, 4 * HID)),
        "fc_w_t":    init(ks[8], (HID, V_TRG)),
        "fc_b":      init(ks[9], (1, V_TRG)),
    }

    src_ids = jax.random.randint(ks[10], (SRC_LEN, BATCH), 0, V_SRC, dtype=jnp.int32)
    ground_truth = jax.random.randint(ks[11], (TRG_LEN, BATCH), 0, V_TRG, dtype=jnp.int32)

    # deterministic teacher forcing decisions (replaces python random.random())
    rng = pyrandom.Random(0)
    tf_list = [0] + [1 if rng.random() < TF_RATIO else 0 for _ in range(1, TRG_LEN)]
    tf_flags = jnp.array(tf_list, dtype=jnp.int32)

    dec_out, predicted = seq2seq_forward(params, src_ids, ground_truth, tf_flags)
    dec_out = jax.block_until_ready(dec_out)
    predicted = jax.block_until_ready(predicted)

    ref_out, ref_pred = seq2seq_reference(params, src_ids, ground_truth, tf_flags)
    np.testing.assert_allclose(np.asarray(dec_out), ref_out, atol=1e-4, rtol=1e-4)
    np.testing.assert_allclose(np.asarray(predicted), ref_pred, atol=0, rtol=0)

    assert dec_out.shape == (TRG_LEN, BATCH, V_TRG)
    assert predicted.shape == (TRG_LEN, BATCH)
    print("KERNEL_OK")
</pallas_src>

<mosaic_0001>
module attributes {stable_mosaic.version = 11 : i64} {
  func.func @seq2seq_kernel(%arg0: memref<8xi32, #tpu.memory_space<smem>>, %arg1: memref<4x8xi32, #tpu.memory_space<vmem>>, %arg2: memref<32x128xf32, #tpu.memory_space<vmem>>, %arg3: memref<32x128xf32, #tpu.memory_space<vmem>>, %arg4: memref<1x128xf32, #tpu.memory_space<vmem>>, %arg5: memref<16x128xf32, #tpu.memory_space<vmem>>, %arg6: memref<32x128xf32, #tpu.memory_space<vmem>>, %arg7: memref<1x128xf32, #tpu.memory_space<vmem>>, %arg8: memref<32x16xf32, #tpu.memory_space<vmem>>, %arg9: memref<1x16xf32, #tpu.memory_space<vmem>>, %arg10: memref<4x128xf32, #tpu.memory_space<vmem>>, %arg11: memref<4x8xf32, #tpu.memory_space<vmem>>) attributes {dimension_semantics = [], scalar_prefetch = 0 : i64, scratch_operands = 0 : i64, tpu.core_type = #tpu.core_type<tc>} {
    %cst = arith.constant 0.000000e+00 : f32
    %0 = vector.broadcast %cst : f32 to vector<4x32xf32>
    %cst_0 = arith.constant 0.000000e+00 : f32
    %1 = vector.broadcast %cst_0 : f32 to vector<4x32xf32>
    %c0 = arith.constant 0 : index
    %c0_1 = arith.constant 0 : index
    %2 = vector.load %arg3[%c0, %c0_1] : memref<32x128xf32, #tpu.memory_space<vmem>>, vector<32x128xf32>
    %c0_2 = arith.constant 0 : index
    %c0_3 = arith.constant 0 : index
    %3 = vector.load %arg4[%c0_2, %c0_3] : memref<1x128xf32, #tpu.memory_space<vmem>>, vector<1x128xf32>
    %c0_4 = arith.constant 0 : index
    %c0_5 = arith.constant 0 : index
    %4 = vector.load %arg2[%c0_4, %c0_5] : memref<32x128xf32, #tpu.memory_space<vmem>>, vector<4x128xf32>
    %cst_6 = arith.constant dense<0.000000e+00> : vector<4x128xf32>
    %5 = tpu.matmul %0, %2, %cst_6 {dimension_numbers = #tpu.dot_dimension_numbers<[1], [0], [0], [1], [0, 0, 1, 1], [], []>} : vector<4x32xf32>, vector<32x128xf32>, vector<4x128xf32> -> vector<4x128xf32>
    %6 = arith.addf %4, %5 : vector<4x128xf32>
    %7 = vector.broadcast %3 : vector<1x128xf32> to vector<4x128xf32>
    %8 = arith.addf %6, %7 : vector<4x128xf32>
    %9 = vector.extract_strided_slice %8 {offsets = [0, 0], sizes = [4, 32], strides = [1, 1]} : vector<4x128xf32> to vector<4x32xf32>
    %10 = arith.negf %9 : vector<4x32xf32>
    %11 = math.exp %10 : vector<4x32xf32>
    %cst_7 = arith.constant 1.000000e+00 : f32
    %12 = vector.broadcast %cst_7 : f32 to vector<4x32xf32>
    %13 = arith.addf %12, %11 : vector<4x32xf32>
    %14 = arith.divf %12, %13 : vector<4x32xf32>
    %15 = vector.extract_strided_slice %8 {offsets = [0, 32], sizes = [4, 32], strides = [1, 1]} : vector<4x128xf32> to vector<4x32xf32>
    %16 = arith.negf %15 : vector<4x32xf32>
    %17 = math.exp %16 : vector<4x32xf32>
    %cst_8 = arith.constant 1.000000e+00 : f32
    %18 = vector.broadcast %cst_8 : f32 to vector<4x32xf32>
    %19 = arith.addf %18, %17 : vector<4x32xf32>
    %20 = arith.divf %18, %19 : vector<4x32xf32>
    %21 = vector.extract_strided_slice %8 {offsets = [0, 64], sizes = [4, 32], strides = [1, 1]} : vector<4x128xf32> to vector<4x32xf32>
    %22 = math.tanh %21 : vector<4x32xf32>
    %23 = vector.extract_strided_slice %8 {offsets = [0, 96], sizes = [4, 32], strides = [1, 1]} : vector<4x128xf32> to vector<4x32xf32>
    %24 = arith.negf %23 : vector<4x32xf32>
    %25 = math.exp %24 : vector<4x32xf32>
    %cst_9 = arith.constant 1.000000e+00 : f32
    %26 = vector.broadcast %cst_9 : f32 to vector<4x32xf32>
    %27 = arith.addf %26, %25 : vector<4x32xf32>
    %28 = arith.divf %26, %27 : vector<4x32xf32>
    %29 = arith.mulf %20, %1 : vector<4x32xf32>
    %30 = arith.mulf %14, %22 : vector<4x32xf32>
    %31 = arith.addf %29, %30 : vector<4x32xf32>
    %32 = math.tanh %31 : vector<4x32xf32>
    %33 = arith.mulf %28, %32 : vector<4x32xf32>
    %c4 = arith.constant 4 : index
    %c0_10 = arith.constant 0 : index
    %34 = vector.load %arg2[%c4, %c0_10] : memref<32x128xf32, #tpu.memory_space<vmem>>, vector<4x128xf32>
    %cst_11 = arith.constant dense<0.000000e+00> : vector<4x128xf32>
    %35 = tpu.matmul %33, %2, %cst_11 {dimension_numbers = #tpu.dot_dimension_numbers<[1], [0], [0], [1], [0, 0, 1, 1], [], []>} : vector<4x32xf32>, vector<32x128xf32>, vector<4x128xf32> -> vector<4x128xf32>
    %36 = arith.addf %34, %35 : vector<4x128xf32>
    %37 = vector.broadcast %3 : vector<1x128xf32> to vector<4x128xf32>
    %38 = arith.addf %36, %37 : vector<4x128xf32>
    %39 = vector.extract_strided_slice %38 {offsets = [0, 0], sizes = [4, 32], strides = [1, 1]} : vector<4x128xf32> to vector<4x32xf32>
    %40 = arith.negf %39 : vector<4x32xf32>
    %41 = math.exp %40 : vector<4x32xf32>
    %cst_12 = arith.constant 1.000000e+00 : f32
    %42 = vector.broadcast %cst_12 : f32 to vector<4x32xf32>
    %43 = arith.addf %42, %41 : vector<4x32xf32>
    %44 = arith.divf %42, %43 : vector<4x32xf32>
    %45 = vector.extract_strided_slice %38 {offsets = [0, 32], sizes = [4, 32], strides = [1, 1]} : vector<4x128xf32> to vector<4x32xf32>
    %46 = arith.negf %45 : vector<4x32xf32>
    %47 = math.exp %46 : vector<4x32xf32>
    %cst_13 = arith.constant 1.000000e+00 : f32
    %48 = vector.broadcast %cst_13 : f32 to vector<4x32xf32>
    %49 = arith.addf %48, %47 : vector<4x32xf32>
    %50 = arith.divf %48, %49 : vector<4x32xf32>
    %51 = vector.extract_strided_slice %38 {offsets = [0, 64], sizes = [4, 32], strides = [1, 1]} : vector<4x128xf32> to vector<4x32xf32>
    %52 = math.tanh %51 : vector<4x32xf32>
    %53 = vector.extract_strided_slice %38 {offsets = [0, 96], sizes = [4, 32], strides = [1, 1]} : vector<4x128xf32> to vector<4x32xf32>
    %54 = arith.negf %53 : vector<4x32xf32>
    %55 = math.exp %54 : vector<4x32xf32>
    %cst_14 = arith.constant 1.000000e+00 : f32
    %56 = vector.broadcast %cst_14 : f32 to vector<4x32xf32>
    %57 = arith.addf %56, %55 : vector<4x32xf32>
    %58 = arith.divf %56, %57 : vector<4x32xf32>
    %59 = arith.mulf %50, %31 : vector<4x32xf32>
    %60 = arith.mulf %44, %52 : vector<4x32xf32>
    %61 = arith.addf %59, %60 : vector<4x32xf32>
    %62 = math.tanh %61 : vector<4x32xf32>
    %63 = arith.mulf %58, %62 : vector<4x32xf32>
    %c8 = arith.constant 8 : index
    %c0_15 = arith.constant 0 : index
    %64 = vector.load %arg2[%c8, %c0_15] : memref<32x128xf32, #tpu.memory_space<vmem>>, vector<4x128xf32>
    %cst_16 = arith.constant dense<0.000000e+00> : vector<4x128xf32>
    %65 = tpu.matmul %63, %2, %cst_16 {dimension_numbers = #tpu.dot_dimension_numbers<[1], [0], [0], [1], [0, 0, 1, 1], [], []>} : vector<4x32xf32>, vector<32x128xf32>, vector<4x128xf32> -> vector<4x128xf32>
    %66 = arith.addf %64, %65 : vector<4x128xf32>
    %67 = vector.broadcast %3 : vector<1x128xf32> to vector<4x128xf32>
    %68 = arith.addf %66, %67 : vector<4x128xf32>
    %69 = vector.extract_strided_slice %68 {offsets = [0, 0], sizes = [4, 32], strides = [1, 1]} : vector<4x128xf32> to vector<4x32xf32>
    %70 = arith.negf %69 : vector<4x32xf32>
    %71 = math.exp %70 : vector<4x32xf32>
    %cst_17 = arith.constant 1.000000e+00 : f32
    %72 = vector.broadcast %cst_17 : f32 to vector<4x32xf32>
    %73 = arith.addf %72, %71 : vector<4x32xf32>
    %74 = arith.divf %72, %73 : vector<4x32xf32>
    %75 = vector.extract_strided_slice %68 {offsets = [0, 32], sizes = [4, 32], strides = [1, 1]} : vector<4x128xf32> to vector<4x32xf32>
    %76 = arith.negf %75 : vector<4x32xf32>
    %77 = math.exp %76 : vector<4x32xf32>
    %cst_18 = arith.constant 1.000000e+00 : f32
    %78 = vector.broadcast %cst_18 : f32 to vector<4x32xf32>
    %79 = arith.addf %78, %77 : vector<4x32xf32>
    %80 = arith.divf %78, %79 : vector<4x32xf32>
    %81 = vector.extract_strided_slice %68 {offsets = [0, 64], sizes = [4, 32], strides = [1, 1]} : vector<4x128xf32> to vector<4x32xf32>
    %82 = math.tanh %81 : vector<4x32xf32>
    %83 = vector.extract_strided_slice %68 {offsets = [0, 96], sizes = [4, 32], strides = [1, 1]} : vector<4x128xf32> to vector<4x32xf32>
    %84 = arith.negf %83 : vector<4x32xf32>
    %85 = math.exp %84 : vector<4x32xf32>
    %cst_19 = arith.constant 1.000000e+00 : f32
    %86 = vector.broadcast %cst_19 : f32 to vector<4x32xf32>
    %87 = arith.addf %86, %85 : vector<4x32xf32>
    %88 = arith.divf %86, %87 : vector<4x32xf32>
    %89 = arith.mulf %80, %61 : vector<4x32xf32>
    %90 = arith.mulf %74, %82 : vector<4x32xf32>
    %91 = arith.addf %89, %90 : vector<4x32xf32>
    %92 = math.tanh %91 : vector<4x32xf32>
    %93 = arith.mulf %88, %92 : vector<4x32xf32>
    %c12 = arith.constant 12 : index
    %c0_20 = arith.constant 0 : index
    %94 = vector.load %arg2[%c12, %c0_20] : memref<32x128xf32, #tpu.memory_space<vmem>>, vector<4x128xf32>
    %cst_21 = arith.constant dense<0.000000e+00> : vector<4x128xf32>
    %95 = tpu.matmul %93, %2, %cst_21 {dimension_numbers = #tpu.dot_dimension_numbers<[1], [0], [0], [1], [0, 0, 1, 1], [], []>} : vector<4x32xf32>, vector<32x128xf32>, vector<4x128xf32> -> vector<4x128xf32>
    %96 = arith.addf %94, %95 : vector<4x128xf32>
    %97 = vector.broadcast %3 : vector<1x128xf32> to vector<4x128xf32>
    %98 = arith.addf %96, %97 : vector<4x128xf32>
    %99 = vector.extract_strided_slice %98 {offsets = [0, 0], sizes = [4, 32], strides = [1, 1]} : vector<4x128xf32> to vector<4x32xf32>
    %100 = arith.negf %99 : vector<4x32xf32>
    %101 = math.exp %100 : vector<4x32xf32>
    %cst_22 = arith.constant 1.000000e+00 : f32
    %102 = vector.broadcast %cst_22 : f32 to vector<4x32xf32>
    %103 = arith.addf %102, %101 : vector<4x32xf32>
    %104 = arith.divf %102, %103 : vector<4x32xf32>
    %105 = vector.extract_strided_slice %98 {offsets = [0, 32], sizes = [4, 32], strides = [1, 1]} : vector<4x128xf32> to vector<4x32xf32>
    %106 = arith.negf %105 : vector<4x32xf32>
    %107 = math.exp %106 : vector<4x32xf32>
    %cst_23 = arith.constant 1.000000e+00 : f32
    %108 = vector.broadcast %cst_23 : f32 to vector<4x32xf32>
    %109 = arith.addf %108, %107 : vector<4x32xf32>
    %110 = arith.divf %108, %109 : vector<4x32xf32>
    %111 = vector.extract_strided_slice %98 {offsets = [0, 64], sizes = [4, 32], strides = [1, 1]} : vector<4x128xf32> to vector<4x32xf32>
    %112 = math.tanh %111 : vector<4x32xf32>
    %113 = vector.extract_strided_slice %98 {offsets = [0, 96], sizes = [4, 32], strides = [1, 1]} : vector<4x128xf32> to vector<4x32xf32>
    %114 = arith.negf %113 : vector<4x32xf32>
    %115 = math.exp %114 : vector<4x32xf32>
    %cst_24 = arith.constant 1.000000e+00 : f32
    %116 = vector.broadcast %cst_24 : f32 to vector<4x32xf32>
    %117 = arith.addf %116, %115 : vector<4x32xf32>
    %118 = arith.divf %116, %117 : vector<4x32xf32>
    %119 = arith.mulf %110, %91 : vector<4x32xf32>
    %120 = arith.mulf %104, %112 : vector<4x32xf32>
    %121 = arith.addf %119, %120 : vector<4x32xf32>
    %122 = math.tanh %121 : vector<4x32xf32>
    %123 = arith.mulf %118, %122 : vector<4x32xf32>
    %c16 = arith.constant 16 : index
    %c0_25 = arith.constant 0 : index
    %124 = vector.load %arg2[%c16, %c0_25] : memref<32x128xf32, #tpu.memory_space<vmem>>, vector<4x128xf32>
    %cst_26 = arith.constant dense<0.000000e+00> : vector<4x128xf32>
    %125 = tpu.matmul %123, %2, %cst_26 {dimension_numbers = #tpu.dot_dimension_numbers<[1], [0], [0], [1], [0, 0, 1, 1], [], []>} : vector<4x32xf32>, vector<32x128xf32>, vector<4x128xf32> -> vector<4x128xf32>
    %126 = arith.addf %124, %125 : vector<4x128xf32>
    %127 = vector.broadcast %3 : vector<1x128xf32> to vector<4x128xf32>
    %128 = arith.addf %126, %127 : vector<4x128xf32>
    %129 = vector.extract_strided_slice %128 {offsets = [0, 0], sizes = [4, 32], strides = [1, 1]} : vector<4x128xf32> to vector<4x32xf32>
    %130 = arith.negf %129 : vector<4x32xf32>
    %131 = math.exp %130 : vector<4x32xf32>
    %cst_27 = arith.constant 1.000000e+00 : f32
    %132 = vector.broadcast %cst_27 : f32 to vector<4x32xf32>
    %133 = arith.addf %132, %131 : vector<4x32xf32>
    %134 = arith.divf %132, %133 : vector<4x32xf32>
    %135 = vector.extract_strided_slice %128 {offsets = [0, 32], sizes = [4, 32], strides = [1, 1]} : vector<4x128xf32> to vector<4x32xf32>
    %136 = arith.negf %135 : vector<4x32xf32>
    %137 = math.exp %136 : vector<4x32xf32>
    %cst_28 = arith.constant 1.000000e+00 : f32
    %138 = vector.broadcast %cst_28 : f32 to vector<4x32xf32>
    %139 = arith.addf %138, %137 : vector<4x32xf32>
    %140 = arith.divf %138, %139 : vector<4x32xf32>
    %141 = vector.extract_strided_slice %128 {offsets = [0, 64], sizes = [4, 32], strides = [1, 1]} : vector<4x128xf32> to vector<4x32xf32>
    %142 = math.tanh %141 : vector<4x32xf32>
    %143 = vector.extract_strided_slice %128 {offsets = [0, 96], sizes = [4, 32], strides = [1, 1]} : vector<4x128xf32> to vector<4x32xf32>
    %144 = arith.negf %143 : vector<4x32xf32>
    %145 = math.exp %144 : vector<4x32xf32>
    %cst_29 = arith.constant 1.000000e+00 : f32
    %146 = vector.broadcast %cst_29 : f32 to vector<4x32xf32>
    %147 = arith.addf %146, %145 : vector<4x32xf32>
    %148 = arith.divf %146, %147 : vector<4x32xf32>
    %149 = arith.mulf %140, %121 : vector<4x32xf32>
    %150 = arith.mulf %134, %142 : vector<4x32xf32>
    %151 = arith.addf %149, %150 : vector<4x32xf32>
    %152 = math.tanh %151 : vector<4x32xf32>
    %153 = arith.mulf %148, %152 : vector<4x32xf32>
    %c20 = arith.constant 20 : index
    %c0_30 = arith.constant 0 : index
    %154 = vector.load %arg2[%c20, %c0_30] : memref<32x128xf32, #tpu.memory_space<vmem>>, vector<4x128xf32>
    %cst_31 = arith.constant dense<0.000000e+00> : vector<4x128xf32>
    %155 = tpu.matmul %153, %2, %cst_31 {dimension_numbers = #tpu.dot_dimension_numbers<[1], [0], [0], [1], [0, 0, 1, 1], [], []>} : vector<4x32xf32>, vector<32x128xf32>, vector<4x128xf32> -> vector<4x128xf32>
    %156 = arith.addf %154, %155 : vector<4x128xf32>
    %157 = vector.broadcast %3 : vector<1x128xf32> to vector<4x128xf32>
    %158 = arith.addf %156, %157 : vector<4x128xf32>
    %159 = vector.extract_strided_slice %158 {offsets = [0, 0], sizes = [4, 32], strides = [1, 1]} : vector<4x128xf32> to vector<4x32xf32>
    %160 = arith.negf %159 : vector<4x32xf32>
    %161 = math.exp %160 : vector<4x32xf32>
    %cst_32 = arith.constant 1.000000e+00 : f32
    %162 = vector.broadcast %cst_32 : f32 to vector<4x32xf32>
    %163 = arith.addf %162, %161 : vector<4x32xf32>
    %164 = arith.divf %162, %163 : vector<4x32xf32>
    %165 = vector.extract_strided_slice %158 {offsets = [0, 32], sizes = [4, 32], strides = [1, 1]} : vector<4x128xf32> to vector<4x32xf32>
    %166 = arith.negf %165 : vector<4x32xf32>
    %167 = math.exp %166 : vector<4x32xf32>
    %cst_33 = arith.constant 1.000000e+00 : f32
    %168 = vector.broadcast %cst_33 : f32 to vector<4x32xf32>
    %169 = arith.addf %168, %167 : vector<4x32xf32>
    %170 = arith.divf %168, %169 : vector<4x32xf32>
    %171 = vector.extract_strided_slice %158 {offsets = [0, 64], sizes = [4, 32], strides = [1, 1]} : vector<4x128xf32> to vector<4x32xf32>
    %172 = math.tanh %171 : vector<4x32xf32>
    %173 = vector.extract_strided_slice %158 {offsets = [0, 96], sizes = [4, 32], strides = [1, 1]} : vector<4x128xf32> to vector<4x32xf32>
    %174 = arith.negf %173 : vector<4x32xf32>
    %175 = math.exp %174 : vector<4x32xf32>
    %cst_34 = arith.constant 1.000000e+00 : f32
    %176 = vector.broadcast %cst_34 : f32 to vector<4x32xf32>
    %177 = arith.addf %176, %175 : vector<4x32xf32>
    %178 = arith.divf %176, %177 : vector<4x32xf32>
    %179 = arith.mulf %170, %151 : vector<4x32xf32>
    %180 = arith.mulf %164, %172 : vector<4x32xf32>
    %181 = arith.addf %179, %180 : vector<4x32xf32>
    %182 = math.tanh %181 : vector<4x32xf32>
    %183 = arith.mulf %178, %182 : vector<4x32xf32>
    %c24 = arith.constant 24 : index
    %c0_35 = arith.constant 0 : index
    %184 = vector.load %arg2[%c24, %c0_35] : memref<32x128xf32, #tpu.memory_space<vmem>>, vector<4x128xf32>
    %cst_36 = arith.constant dense<0.000000e+00> : vector<4x128xf32>
    %185 = tpu.matmul %183, %2, %cst_36 {dimension_numbers = #tpu.dot_dimension_numbers<[1], [0], [0], [1], [0, 0, 1, 1], [], []>} : vector<4x32xf32>, vector<32x128xf32>, vector<4x128xf32> -> vector<4x128xf32>
    %186 = arith.addf %184, %185 : vector<4x128xf32>
    %187 = vector.broadcast %3 : vector<1x128xf32> to vector<4x128xf32>
    %188 = arith.addf %186, %187 : vector<4x128xf32>
    %189 = vector.extract_strided_slice %188 {offsets = [0, 0], sizes = [4, 32], strides = [1, 1]} : vector<4x128xf32> to vector<4x32xf32>
    %190 = arith.negf %189 : vector<4x32xf32>
    %191 = math.exp %190 : vector<4x32xf32>
    %cst_37 = arith.constant 1.000000e+00 : f32
    %192 = vector.broadcast %cst_37 : f32 to vector<4x32xf32>
    %193 = arith.addf %192, %191 : vector<4x32xf32>
    %194 = arith.divf %192, %193 : vector<4x32xf32>
    %195 = vector.extract_strided_slice %188 {offsets = [0, 32], sizes = [4, 32], strides = [1, 1]} : vector<4x128xf32> to vector<4x32xf32>
    %196 = arith.negf %195 : vector<4x32xf32>
    %197 = math.exp %196 : vector<4x32xf32>
    %cst_38 = arith.constant 1.000000e+00 : f32
    %198 = vector.broadcast %cst_38 : f32 to vector<4x32xf32>
    %199 = arith.addf %198, %197 : vector<4x32xf32>
    %200 = arith.divf %198, %199 : vector<4x32xf32>
    %201 = vector.extract_strided_slice %188 {offsets = [0, 64], sizes = [4, 32], strides = [1, 1]} : vector<4x128xf32> to vector<4x32xf32>
    %202 = math.tanh %201 : vector<4x32xf32>
    %203 = vector.extract_strided_slice %188 {offsets = [0, 96], sizes = [4, 32], strides = [1, 1]} : vector<4x128xf32> to vector<4x32xf32>
    %204 = arith.negf %203 : vector<4x32xf32>
    %205 = math.exp %204 : vector<4x32xf32>
    %cst_39 = arith.constant 1.000000e+00 : f32
    %206 = vector.broadcast %cst_39 : f32 to vector<4x32xf32>
    %207 = arith.addf %206, %205 : vector<4x32xf32>
    %208 = arith.divf %206, %207 : vector<4x32xf32>
    %209 = arith.mulf %200, %181 : vector<4x32xf32>
    %210 = arith.mulf %194, %202 : vector<4x32xf32>
    %211 = arith.addf %209, %210 : vector<4x32xf32>
    %212 = math.tanh %211 : vector<4x32xf32>
    %213 = arith.mulf %208, %212 : vector<4x32xf32>
    %c28 = arith.constant 28 : index
    %c0_40 = arith.constant 0 : index
    %214 = vector.load %arg2[%c28, %c0_40] : memref<32x128xf32, #tpu.memory_space<vmem>>, vector<4x128xf32>
    %cst_41 = arith.constant dense<0.000000e+00> : vector<4x128xf32>
    %215 = tpu.matmul %213, %2, %cst_41 {dimension_numbers = #tpu.dot_dimension_numbers<[1], [0], [0], [1], [0, 0, 1, 1], [], []>} : vector<4x32xf32>, vector<32x128xf32>, vector<4x128xf32> -> vector<4x128xf32>
    %216 = arith.addf %214, %215 : vector<4x128xf32>
    %217 = vector.broadcast %3 : vector<1x128xf32> to vector<4x128xf32>
    %218 = arith.addf %216, %217 : vector<4x128xf32>
    %219 = vector.extract_strided_slice %218 {offsets = [0, 0], sizes = [4, 32], strides = [1, 1]} : vector<4x128xf32> to vector<4x32xf32>
    %220 = arith.negf %219 : vector<4x32xf32>
    %221 = math.exp %220 : vector<4x32xf32>
    %cst_42 = arith.constant 1.000000e+00 : f32
    %222 = vector.broadcast %cst_42 : f32 to vector<4x32xf32>
    %223 = arith.addf %222, %221 : vector<4x32xf32>
    %224 = arith.divf %222, %223 : vector<4x32xf32>
    %225 = vector.extract_strided_slice %218 {offsets = [0, 32], sizes = [4, 32], strides = [1, 1]} : vector<4x128xf32> to vector<4x32xf32>
    %226 = arith.negf %225 : vector<4x32xf32>
    %227 = math.exp %226 : vector<4x32xf32>
    %cst_43 = arith.constant 1.000000e+00 : f32
    %228 = vector.broadcast %cst_43 : f32 to vector<4x32xf32>
    %229 = arith.addf %228, %227 : vector<4x32xf32>
    %230 = arith.divf %228, %229 : vector<4x32xf32>
    %231 = vector.extract_strided_slice %218 {offsets = [0, 64], sizes = [4, 32], strides = [1, 1]} : vector<4x128xf32> to vector<4x32xf32>
    %232 = math.tanh %231 : vector<4x32xf32>
    %233 = vector.extract_strided_slice %218 {offsets = [0, 96], sizes = [4, 32], strides = [1, 1]} : vector<4x128xf32> to vector<4x32xf32>
    %234 = arith.negf %233 : vector<4x32xf32>
    %235 = math.exp %234 : vector<4x32xf32>
    %cst_44 = arith.constant 1.000000e+00 : f32
    %236 = vector.broadcast %cst_44 : f32 to vector<4x32xf32>
    %237 = arith.addf %236, %235 : vector<4x32xf32>
    %238 = arith.divf %236, %237 : vector<4x32xf32>
    %239 = arith.mulf %230, %211 : vector<4x32xf32>
    %240 = arith.mulf %224, %232 : vector<4x32xf32>
    %241 = arith.addf %239, %240 : vector<4x32xf32>
    %242 = math.tanh %241 : vector<4x32xf32>
    %243 = arith.mulf %238, %242 : vector<4x32xf32>
    %c0_45 = arith.constant 0 : index
    %c0_46 = arith.constant 0 : index
    %244 = vector.load %arg5[%c0_45, %c0_46] : memref<16x128xf32, #tpu.memory_space<vmem>>, vector<16x128xf32>
    %c0_47 = arith.constant 0 : index
    %c0_48 = arith.constant 0 : index
    %245 = vector.load %arg6[%c0_47, %c0_48] : memref<32x128xf32, #tpu.memory_space<vmem>>, vector<32x128xf32>
    %c0_49 = arith.constant 0 : index
    %c0_50 = arith.constant 0 : index
    %246 = vector.load %arg7[%c0_49, %c0_50] : memref<1x128xf32, #tpu.memory_space<vmem>>, vector<1x128xf32>
    %c0_51 = arith.constant 0 : index
    %c0_52 = arith.constant 0 : index
    %247 = vector.load %arg8[%c0_51, %c0_52] : memref<32x16xf32, #tpu.memory_space<vmem>>, vector<32x16xf32>
    %c0_53 = arith.constant 0 : index
    %c0_54 = arith.constant 0 : index
    %248 = vector.load %arg9[%c0_53, %c0_54] : memref<1x16xf32, #tpu.memory_space<vmem>>, vector<1x16xf32>
    %249 = tpu.iota {dimensions = array<i32: 1>} : vector<4x16xi32>
    %c0_55 = arith.constant 0 : index
    %c0_56 = arith.constant 0 : index
    %250 = vector.load %arg1[%c0_55, %c0_56] : memref<4x8xi32, #tpu.memory_space<vmem>>, vector<4x1xi32>
    %cst_57 = arith.constant 0.000000e+00 : f32
    %251 = vector.broadcast %cst_57 : f32 to vector<4x16xf32>
    %cst_58 = arith.constant 0.000000e+00 : f32
    %252 = vector.broadcast %cst_58 : f32 to vector<4x1xf32>
    %253 = vector.broadcast %250 : vector<4x1xi32> to vector<4x16xi32>
    %254 = arith.cmpi eq, %249, %253 : vector<4x16xi32>
    %255 = arith.extui %254 : vector<4x16xi1> to vector<4x16xi32>
    %256 = arith.sitofp %255 : vector<4x16xi32> to vector<4x16xf32>
    %cst_59 = arith.constant dense<0.000000e+00> : vector<4x128xf32>
    %257 = tpu.matmul %256, %244, %cst_59 {dimension_numbers = #tpu.dot_dimension_numbers<[1], [0], [0], [1], [0, 0, 1, 1], [], []>} : vector<4x16xf32>, vector<16x128xf32>, vector<4x128xf32> -> vector<4x128xf32>
    %cst_60 = arith.constant dense<0.000000e+00> : vector<4x128xf32>
    %258 = tpu.matmul %243, %245, %cst_60 {dimension_numbers = #tpu.dot_dimension_numbers<[1], [0], [0], [1], [0, 0, 1, 1], [], []>} : vector<4x32xf32>, vector<32x128xf32>, vector<4x128xf32> -> vector<4x128xf32>
    %259 = arith.addf %257, %258 : vector<4x128xf32>
    %260 = vector.broadcast %246 : vector<1x128xf32> to vector<4x128xf32>
    %261 = arith.addf %259, %260 : vector<4x128xf32>
    %262 = vector.extract_strided_slice %261 {offsets = [0, 0], sizes = [4, 32], strides = [1, 1]} : vector<4x128xf32> to vector<4x32xf32>
    %263 = arith.negf %262 : vector<4x32xf32>
    %264 = math.exp %263 : vector<4x32xf32>
    %cst_61 = arith.constant 1.000000e+00 : f32
    %265 = vector.broadcast %cst_61 : f32 to vector<4x32xf32>
    %266 = arith.addf %265, %264 : vector<4x32xf32>
    %267 = arith.divf %265, %266 : vector<4x32xf32>
    %268 = vector.extract_strided_slice %261 {offsets = [0, 32], sizes = [4, 32], strides = [1, 1]} : vector<4x128xf32> to vector<4x32xf32>
    %269 = arith.negf %268 : vector<4x32xf32>
    %270 = math.exp %269 : vector<4x32xf32>
    %cst_62 = arith.constant 1.000000e+00 : f32
    %271 = vector.broadcast %cst_62 : f32 to vector<4x32xf32>
    %272 = arith.addf %271, %270 : vector<4x32xf32>
    %273 = arith.divf %271, %272 : vector<4x32xf32>
    %274 = vector.extract_strided_slice %261 {offsets = [0, 64], sizes = [4, 32], strides = [1, 1]} : vector<4x128xf32> to vector<4x32xf32>
    %275 = math.tanh %274 : vector<4x32xf32>
    %276 = vector.extract_strided_slice %261 {offsets = [0, 96], sizes = [4, 32], strides = [1, 1]} : vector<4x128xf32> to vector<4x32xf32>
    %277 = arith.negf %276 : vector<4x32xf32>
    %278 = math.exp %277 : vector<4x32xf32>
    %cst_63 = arith.constant 1.000000e+00 : f32
    %279 = vector.broadcast %cst_63 : f32 to vector<4x32xf32>
    %280 = arith.addf %279, %278 : vector<4x32xf32>
    %281 = arith.divf %279, %280 : vector<4x32xf32>
    %282 = arith.mulf %273, %241 : vector<4x32xf32>
    %283 = arith.mulf %267, %275 : vector<4x32xf32>
    %284 = arith.addf %282, %283 : vector<4x32xf32>
    %285 = math.tanh %284 : vector<4x32xf32>
    %286 = arith.mulf %281, %285 : vector<4x32xf32>
    %cst_64 = arith.constant dense<0.000000e+00> : vector<4x16xf32>
    %287 = tpu.matmul %286, %247, %cst_64 {dimension_numbers = #tpu.dot_dimension_numbers<[1], [0], [0], [1], [0, 0, 1, 1], [], []>} : vector<4x32xf32>, vector<32x16xf32>, vector<4x16xf32> -> vector<4x16xf32>
    %288 = vector.broadcast %248 : vector<1x16xf32> to vector<4x16xf32>
    %289 = arith.addf %287, %288 : vector<4x16xf32>
    %cst_65 = arith.constant dense<0xFF800000> : vector<4xf32>
    %290 = vector.multi_reduction <maximumf>, %289, %cst_65 [1] : vector<4x16xf32> to vector<4xf32>
    %291 = vector.shape_cast %290 : vector<4xf32> to vector<4x1xf32>
    %292 = vector.broadcast %291 : vector<4x1xf32> to vector<4x16xf32>
    %293 = arith.cmpf oeq, %289, %292 : vector<4x16xf32>
    %c16_i32 = arith.constant 16 : i32
    %294 = vector.broadcast %c16_i32 : i32 to vector<4x16xi32>
    %295 = arith.select %293, %249, %294 : vector<4x16xi1>, vector<4x16xi32>
    %cst_66 = arith.constant dense<2147483647> : vector<4xi32>
    %296 = vector.multi_reduction <minsi>, %295, %cst_66 [1] : vector<4x16xi32> to vector<4xi32>
    %297 = vector.shape_cast %296 : vector<4xi32> to vector<4x1xi32>
    %298 = arith.sitofp %297 : vector<4x1xi32> to vector<4x1xf32>
    %c1 = arith.constant 1 : index
    %299 = memref.load %arg0[%c1] : memref<8xi32, #tpu.memory_space<smem>>
    %c0_67 = arith.constant 0 : index
    %c1_68 = arith.constant 1 : index
    %300 = vector.load %arg1[%c0_67, %c1_68] : memref<4x8xi32, #tpu.memory_space<vmem>>, vector<4x1xi32>
    %c0_i32 = arith.constant 0 : i32
    %301 = arith.cmpi sgt, %299, %c0_i32 : i32
    %302 = arith.select %301, %300, %297 : vector<4x1xi32>
    %303 = vector.broadcast %302 : vector<4x1xi32> to vector<4x16xi32>
    %304 = arith.cmpi eq, %249, %303 : vector<4x16xi32>
    %305 = arith.extui %304 : vector<4x16xi1> to vector<4x16xi32>
    %306 = arith.sitofp %305 : vector<4x16xi32> to vector<4x16xf32>
    %cst_69 = arith.constant dense<0.000000e+00> : vector<4x128xf32>
    %307 = tpu.matmul %306, %244, %cst_69 {dimension_numbers = #tpu.dot_dimension_numbers<[1], [0], [0], [1], [0, 0, 1, 1], [], []>} : vector<4x16xf32>, vector<16x128xf32>, vector<4x128xf32> -> vector<4x128xf32>
    %cst_70 = arith.constant dense<0.000000e+00> : vector<4x128xf32>
    %308 = tpu.matmul %286, %245, %cst_70 {dimension_numbers = #tpu.dot_dimension_numbers<[1], [0], [0], [1], [0, 0, 1, 1], [], []>} : vector<4x32xf32>, vector<32x128xf32>, vector<4x128xf32> -> vector<4x128xf32>
    %309 = arith.addf %307, %308 : vector<4x128xf32>
    %310 = vector.broadcast %246 : vector<1x128xf32> to vector<4x128xf32>
    %311 = arith.addf %309, %310 : vector<4x128xf32>
    %312 = vector.extract_strided_slice %311 {offsets = [0, 0], sizes = [4, 32], strides = [1, 1]} : vector<4x128xf32> to vector<4x32xf32>
    %313 = arith.negf %312 : vector<4x32xf32>
    %314 = math.exp %313 : vector<4x32xf32>
    %cst_71 = arith.constant 1.000000e+00 : f32
    %315 = vector.broadcast %cst_71 : f32 to vector<4x32xf32>
    %316 = arith.addf %315, %314 : vector<4x32xf32>
    %317 = arith.divf %315, %316 : vector<4x32xf32>
    %318 = vector.extract_strided_slice %311 {offsets = [0, 32], sizes = [4, 32], strides = [1, 1]} : vector<4x128xf32> to vector<4x32xf32>
    %319 = arith.negf %318 : vector<4x32xf32>
    %320 = math.exp %319 : vector<4x32xf32>
    %cst_72 = arith.constant 1.000000e+00 : f32
    %321 = vector.broadcast %cst_72 : f32 to vector<4x32xf32>
    %322 = arith.addf %321, %320 : vector<4x32xf32>
    %323 = arith.divf %321, %322 : vector<4x32xf32>
    %324 = vector.extract_strided_slice %311 {offsets = [0, 64], sizes = [4, 32], strides = [1, 1]} : vector<4x128xf32> to vector<4x32xf32>
    %325 = math.tanh %324 : vector<4x32xf32>
    %326 = vector.extract_strided_slice %311 {offsets = [0, 96], sizes = [4, 32], strides = [1, 1]} : vector<4x128xf32> to vector<4x32xf32>
    %327 = arith.negf %326 : vector<4x32xf32>
    %328 = math.exp %327 : vector<4x32xf32>
    %cst_73 = arith.constant 1.000000e+00 : f32
    %329 = vector.broadcast %cst_73 : f32 to vector<4x32xf32>
    %330 = arith.addf %329, %328 : vector<4x32xf32>
    %331 = arith.divf %329, %330 : vector<4x32xf32>
    %332 = arith.mulf %323, %284 : vector<4x32xf32>
    %333 = arith.mulf %317, %325 : vector<4x32xf32>
    %334 = arith.addf %332, %333 : vector<4x32xf32>
    %335 = math.tanh %334 : vector<4x32xf32>
    %336 = arith.mulf %331, %335 : vector<4x32xf32>
    %cst_74 = arith.constant dense<0.000000e+00> : vector<4x16xf32>
    %337 = tpu.matmul %336, %247, %cst_74 {dimension_numbers = #tpu.dot_dimension_numbers<[1], [0], [0], [1], [0, 0, 1, 1], [], []>} : vector<4x32xf32>, vector<32x16xf32>, vector<4x16xf32> -> vector<4x16xf32>
    %338 = vector.broadcast %248 : vector<1x16xf32> to vector<4x16xf32>
    %339 = arith.addf %337, %338 : vector<4x16xf32>
    %cst_75 = arith.constant dense<0xFF800000> : vector<4xf32>
    %340 = vector.multi_reduction <maximumf>, %339, %cst_75 [1] : vector<4x16xf32> to vector<4xf32>
    %341 = vector.shape_cast %340 : vector<4xf32> to vector<4x1xf32>
    %342 = vector.broadcast %341 : vector<4x1xf32> to vector<4x16xf32>
    %343 = arith.cmpf oeq, %339, %342 : vector<4x16xf32>
    %c16_i32_76 = arith.constant 16 : i32
    %344 = vector.broadcast %c16_i32_76 : i32 to vector<4x16xi32>
    %345 = arith.select %343, %249, %344 : vector<4x16xi1>, vector<4x16xi32>
    %cst_77 = arith.constant dense<2147483647> : vector<4xi32>
    %346 = vector.multi_reduction <minsi>, %345, %cst_77 [1] : vector<4x16xi32> to vector<4xi32>
    %347 = vector.shape_cast %346 : vector<4xi32> to vector<4x1xi32>
    %348 = arith.sitofp %347 : vector<4x1xi32> to vector<4x1xf32>
    %c2 = arith.constant 2 : index
    %349 = memref.load %arg0[%c2] : memref<8xi32, #tpu.memory_space<smem>>
    %c0_78 = arith.constant 0 : index
    %c2_79 = arith.constant 2 : index
    %350 = vector.load %arg1[%c0_78, %c2_79] : memref<4x8xi32, #tpu.memory_space<vmem>>, vector<4x1xi32>
    %c0_i32_80 = arith.constant 0 : i32
    %351 = arith.cmpi sgt, %349, %c0_i32_80 : i32
    %352 = arith.select %351, %350, %347 : vector<4x1xi32>
    %353 = vector.broadcast %352 : vector<4x1xi32> to vector<4x16xi32>
    %354 = arith.cmpi eq, %249, %353 : vector<4x16xi32>
    %355 = arith.extui %354 : vector<4x16xi1> to vector<4x16xi32>
    %356 = arith.sitofp %355 : vector<4x16xi32> to vector<4x16xf32>
    %cst_81 = arith.constant dense<0.000000e+00> : vector<4x128xf32>
    %357 = tpu.matmul %356, %244, %cst_81 {dimension_numbers = #tpu.dot_dimension_numbers<[1], [0], [0], [1], [0, 0, 1, 1], [], []>} : vector<4x16xf32>, vector<16x128xf32>, vector<4x128xf32> -> vector<4x128xf32>
    %cst_82 = arith.constant dense<0.000000e+00> : vector<4x128xf32>
    %358 = tpu.matmul %336, %245, %cst_82 {dimension_numbers = #tpu.dot_dimension_numbers<[1], [0], [0], [1], [0, 0, 1, 1], [], []>} : vector<4x32xf32>, vector<32x128xf32>, vector<4x128xf32> -> vector<4x128xf32>
    %359 = arith.addf %357, %358 : vector<4x128xf32>
    %360 = vector.broadcast %246 : vector<1x128xf32> to vector<4x128xf32>
    %361 = arith.addf %359, %360 : vector<4x128xf32>
    %362 = vector.extract_strided_slice %361 {offsets = [0, 0], sizes = [4, 32], strides = [1, 1]} : vector<4x128xf32> to vector<4x32xf32>
    %363 = arith.negf %362 : vector<4x32xf32>
    %364 = math.exp %363 : vector<4x32xf32>
    %cst_83 = arith.constant 1.000000e+00 : f32
    %365 = vector.broadcast %cst_83 : f32 to vector<4x32xf32>
    %366 = arith.addf %365, %364 : vector<4x32xf32>
    %367 = arith.divf %365, %366 : vector<4x32xf32>
    %368 = vector.extract_strided_slice %361 {offsets = [0, 32], sizes = [4, 32], strides = [1, 1]} : vector<4x128xf32> to vector<4x32xf32>
    %369 = arith.negf %368 : vector<4x32xf32>
    %370 = math.exp %369 : vector<4x32xf32>
    %cst_84 = arith.constant 1.000000e+00 : f32
    %371 = vector.broadcast %cst_84 : f32 to vector<4x32xf32>
    %372 = arith.addf %371, %370 : vector<4x32xf32>
    %373 = arith.divf %371, %372 : vector<4x32xf32>
    %374 = vector.extract_strided_slice %361 {offsets = [0, 64], sizes = [4, 32], strides = [1, 1]} : vector<4x128xf32> to vector<4x32xf32>
    %375 = math.tanh %374 : vector<4x32xf32>
    %376 = vector.extract_strided_slice %361 {offsets = [0, 96], sizes = [4, 32], strides = [1, 1]} : vector<4x128xf32> to vector<4x32xf32>
    %377 = arith.negf %376 : vector<4x32xf32>
    %378 = math.exp %377 : vector<4x32xf32>
    %cst_85 = arith.constant 1.000000e+00 : f32
    %379 = vector.broadcast %cst_85 : f32 to vector<4x32xf32>
    %380 = arith.addf %379, %378 : vector<4x32xf32>
    %381 = arith.divf %379, %380 : vector<4x32xf32>
    %382 = arith.mulf %373, %334 : vector<4x32xf32>
    %383 = arith.mulf %367, %375 : vector<4x32xf32>
    %384 = arith.addf %382, %383 : vector<4x32xf32>
    %385 = math.tanh %384 : vector<4x32xf32>
    %386 = arith.mulf %381, %385 : vector<4x32xf32>
    %cst_86 = arith.constant dense<0.000000e+00> : vector<4x16xf32>
    %387 = tpu.matmul %386, %247, %cst_86 {dimension_numbers = #tpu.dot_dimension_numbers<[1], [0], [0], [1], [0, 0, 1, 1], [], []>} : vector<4x32xf32>, vector<32x16xf32>, vector<4x16xf32> -> vector<4x16xf32>
    %388 = vector.broadcast %248 : vector<1x16xf32> to vector<4x16xf32>
    %389 = arith.addf %387, %388 : vector<4x16xf32>
    %cst_87 = arith.constant dense<0xFF800000> : vector<4xf32>
    %390 = vector.multi_reduction <maximumf>, %389, %cst_87 [1] : vector<4x16xf32> to vector<4xf32>
    %391 = vector.shape_cast %390 : vector<4xf32> to vector<4x1xf32>
    %392 = vector.broadcast %391 : vector<4x1xf32> to vector<4x16xf32>
    %393 = arith.cmpf oeq, %389, %392 : vector<4x16xf32>
    %c16_i32_88 = arith.constant 16 : i32
    %394 = vector.broadcast %c16_i32_88 : i32 to vector<4x16xi32>
    %395 = arith.select %393, %249, %394 : vector<4x16xi1>, vector<4x16xi32>
    %cst_89 = arith.constant dense<2147483647> : vector<4xi32>
    %396 = vector.multi_reduction <minsi>, %395, %cst_89 [1] : vector<4x16xi32> to vector<4xi32>
    %397 = vector.shape_cast %396 : vector<4xi32> to vector<4x1xi32>
    %398 = arith.sitofp %397 : vector<4x1xi32> to vector<4x1xf32>
    %c3 = arith.constant 3 : index
    %399 = memref.load %arg0[%c3] : memref<8xi32, #tpu.memory_space<smem>>
    %c0_90 = arith.constant 0 : index
    %c3_91 = arith.constant 3 : index
    %400 = vector.load %arg1[%c0_90, %c3_91] : memref<4x8xi32, #tpu.memory_space<vmem>>, vector<4x1xi32>
    %c0_i32_92 = arith.constant 0 : i32
    %401 = arith.cmpi sgt, %399, %c0_i32_92 : i32
    %402 = arith.select %401, %400, %397 : vector<4x1xi32>
    %403 = vector.broadcast %402 : vector<4x1xi32> to vector<4x16xi32>
    %404 = arith.cmpi eq, %249, %403 : vector<4x16xi32>
    %405 = arith.extui %404 : vector<4x16xi1> to vector<4x16xi32>
    %406 = arith.sitofp %405 : vector<4x16xi32> to vector<4x16xf32>
    %cst_93 = arith.constant dense<0.000000e+00> : vector<4x128xf32>
    %407 = tpu.matmul %406, %244, %cst_93 {dimension_numbers = #tpu.dot_dimension_numbers<[1], [0], [0], [1], [0, 0, 1, 1], [], []>} : vector<4x16xf32>, vector<16x128xf32>, vector<4x128xf32> -> vector<4x128xf32>
    %cst_94 = arith.constant dense<0.000000e+00> : vector<4x128xf32>
    %408 = tpu.matmul %386, %245, %cst_94 {dimension_numbers = #tpu.dot_dimension_numbers<[1], [0], [0], [1], [0, 0, 1, 1], [], []>} : vector<4x32xf32>, vector<32x128xf32>, vector<4x128xf32> -> vector<4x128xf32>
    %409 = arith.addf %407, %408 : vector<4x128xf32>
    %410 = vector.broadcast %246 : vector<1x128xf32> to vector<4x128xf32>
    %411 = arith.addf %409, %410 : vector<4x128xf32>
    %412 = vector.extract_strided_slice %411 {offsets = [0, 0], sizes = [4, 32], strides = [1, 1]} : vector<4x128xf32> to vector<4x32xf32>
    %413 = arith.negf %412 : vector<4x32xf32>
    %414 = math.exp %413 : vector<4x32xf32>
    %cst_95 = arith.constant 1.000000e+00 : f32
    %415 = vector.broadcast %cst_95 : f32 to vector<4x32xf32>
    %416 = arith.addf %415, %414 : vector<4x32xf32>
    %417 = arith.divf %415, %416 : vector<4x32xf32>
    %418 = vector.extract_strided_slice %411 {offsets = [0, 32], sizes = [4, 32], strides = [1, 1]} : vector<4x128xf32> to vector<4x32xf32>
    %419 = arith.negf %418 : vector<4x32xf32>
    %420 = math.exp %419 : vector<4x32xf32>
    %cst_96 = arith.constant 1.000000e+00 : f32
    %421 = vector.broadcast %cst_96 : f32 to vector<4x32xf32>
    %422 = arith.addf %421, %420 : vector<4x32xf32>
    %423 = arith.divf %421, %422 : vector<4x32xf32>
    %424 = vector.extract_strided_slice %411 {offsets = [0, 64], sizes = [4, 32], strides = [1, 1]} : vector<4x128xf32> to vector<4x32xf32>
    %425 = math.tanh %424 : vector<4x32xf32>
    %426 = vector.extract_strided_slice %411 {offsets = [0, 96], sizes = [4, 32], strides = [1, 1]} : vector<4x128xf32> to vector<4x32xf32>
    %427 = arith.negf %426 : vector<4x32xf32>
    %428 = math.exp %427 : vector<4x32xf32>
    %cst_97 = arith.constant 1.000000e+00 : f32
    %429 = vector.broadcast %cst_97 : f32 to vector<4x32xf32>
    %430 = arith.addf %429, %428 : vector<4x32xf32>
    %431 = arith.divf %429, %430 : vector<4x32xf32>
    %432 = arith.mulf %423, %384 : vector<4x32xf32>
    %433 = arith.mulf %417, %425 : vector<4x32xf32>
    %434 = arith.addf %432, %433 : vector<4x32xf32>
    %435 = math.tanh %434 : vector<4x32xf32>
    %436 = arith.mulf %431, %435 : vector<4x32xf32>
    %cst_98 = arith.constant dense<0.000000e+00> : vector<4x16xf32>
    %437 = tpu.matmul %436, %247, %cst_98 {dimension_numbers = #tpu.dot_dimension_numbers<[1], [0], [0], [1], [0, 0, 1, 1], [], []>} : vector<4x32xf32>, vector<32x16xf32>, vector<4x16xf32> -> vector<4x16xf32>
    %438 = vector.broadcast %248 : vector<1x16xf32> to vector<4x16xf32>
    %439 = arith.addf %437, %438 : vector<4x16xf32>
    %cst_99 = arith.constant dense<0xFF800000> : vector<4xf32>
    %440 = vector.multi_reduction <maximumf>, %439, %cst_99 [1] : vector<4x16xf32> to vector<4xf32>
    %441 = vector.shape_cast %440 : vector<4xf32> to vector<4x1xf32>
    %442 = vector.broadcast %441 : vector<4x1xf32> to vector<4x16xf32>
    %443 = arith.cmpf oeq, %439, %442 : vector<4x16xf32>
    %c16_i32_100 = arith.constant 16 : i32
    %444 = vector.broadcast %c16_i32_100 : i32 to vector<4x16xi32>
    %445 = arith.select %443, %249, %444 : vector<4x16xi1>, vector<4x16xi32>
    %cst_101 = arith.constant dense<2147483647> : vector<4xi32>
    %446 = vector.multi_reduction <minsi>, %445, %cst_101 [1] : vector<4x16xi32> to vector<4xi32>
    %447 = vector.shape_cast %446 : vector<4xi32> to vector<4x1xi32>
    %448 = arith.sitofp %447 : vector<4x1xi32> to vector<4x1xf32>
    %c4_102 = arith.constant 4 : index
    %449 = memref.load %arg0[%c4_102] : memref<8xi32, #tpu.memory_space<smem>>
    %c0_103 = arith.constant 0 : index
    %c4_104 = arith.constant 4 : index
    %450 = vector.load %arg1[%c0_103, %c4_104] : memref<4x8xi32, #tpu.memory_space<vmem>>, vector<4x1xi32>
    %c0_i32_105 = arith.constant 0 : i32
    %451 = arith.cmpi sgt, %449, %c0_i32_105 : i32
    %452 = arith.select %451, %450, %447 : vector<4x1xi32>
    %453 = vector.broadcast %452 : vector<4x1xi32> to vector<4x16xi32>
    %454 = arith.cmpi eq, %249, %453 : vector<4x16xi32>
    %455 = arith.extui %454 : vector<4x16xi1> to vector<4x16xi32>
    %456 = arith.sitofp %455 : vector<4x16xi32> to vector<4x16xf32>
    %cst_106 = arith.constant dense<0.000000e+00> : vector<4x128xf32>
    %457 = tpu.matmul %456, %244, %cst_106 {dimension_numbers = #tpu.dot_dimension_numbers<[1], [0], [0], [1], [0, 0, 1, 1], [], []>} : vector<4x16xf32>, vector<16x128xf32>, vector<4x128xf32> -> vector<4x128xf32>
    %cst_107 = arith.constant dense<0.000000e+00> : vector<4x128xf32>
    %458 = tpu.matmul %436, %245, %cst_107 {dimension_numbers = #tpu.dot_dimension_numbers<[1], [0], [0], [1], [0, 0, 1, 1], [], []>} : vector<4x32xf32>, vector<32x128xf32>, vector<4x128xf32> -> vector<4x128xf32>
    %459 = arith.addf %457, %458 : vector<4x128xf32>
    %460 = vector.broadcast %246 : vector<1x128xf32> to vector<4x128xf32>
    %461 = arith.addf %459, %460 : vector<4x128xf32>
    %462 = vector.extract_strided_slice %461 {offsets = [0, 0], sizes = [4, 32], strides = [1, 1]} : vector<4x128xf32> to vector<4x32xf32>
    %463 = arith.negf %462 : vector<4x32xf32>
    %464 = math.exp %463 : vector<4x32xf32>
    %cst_108 = arith.constant 1.000000e+00 : f32
    %465 = vector.broadcast %cst_108 : f32 to vector<4x32xf32>
    %466 = arith.addf %465, %464 : vector<4x32xf32>
    %467 = arith.divf %465, %466 : vector<4x32xf32>
    %468 = vector.extract_strided_slice %461 {offsets = [0, 32], sizes = [4, 32], strides = [1, 1]} : vector<4x128xf32> to vector<4x32xf32>
    %469 = arith.negf %468 : vector<4x32xf32>
    %470 = math.exp %469 : vector<4x32xf32>
    %cst_109 = arith.constant 1.000000e+00 : f32
    %471 = vector.broadcast %cst_109 : f32 to vector<4x32xf32>
    %472 = arith.addf %471, %470 : vector<4x32xf32>
    %473 = arith.divf %471, %472 : vector<4x32xf32>
    %474 = vector.extract_strided_slice %461 {offsets = [0, 64], sizes = [4, 32], strides = [1, 1]} : vector<4x128xf32> to vector<4x32xf32>
    %475 = math.tanh %474 : vector<4x32xf32>
    %476 = vector.extract_strided_slice %461 {offsets = [0, 96], sizes = [4, 32], strides = [1, 1]} : vector<4x128xf32> to vector<4x32xf32>
    %477 = arith.negf %476 : vector<4x32xf32>
    %478 = math.exp %477 : vector<4x32xf32>
    %cst_110 = arith.constant 1.000000e+00 : f32
    %479 = vector.broadcast %cst_110 : f32 to vector<4x32xf32>
    %480 = arith.addf %479, %478 : vector<4x32xf32>
    %481 = arith.divf %479, %480 : vector<4x32xf32>
    %482 = arith.mulf %473, %434 : vector<4x32xf32>
    %483 = arith.mulf %467, %475 : vector<4x32xf32>
    %484 = arith.addf %482, %483 : vector<4x32xf32>
    %485 = math.tanh %484 : vector<4x32xf32>
    %486 = arith.mulf %481, %485 : vector<4x32xf32>
    %cst_111 = arith.constant dense<0.000000e+00> : vector<4x16xf32>
    %487 = tpu.matmul %486, %247, %cst_111 {dimension_numbers = #tpu.dot_dimension_numbers<[1], [0], [0], [1], [0, 0, 1, 1], [], []>} : vector<4x32xf32>, vector<32x16xf32>, vector<4x16xf32> -> vector<4x16xf32>
    %488 = vector.broadcast %248 : vector<1x16xf32> to vector<4x16xf32>
    %489 = arith.addf %487, %488 : vector<4x16xf32>
    %cst_112 = arith.constant dense<0xFF800000> : vector<4xf32>
    %490 = vector.multi_reduction <maximumf>, %489, %cst_112 [1] : vector<4x16xf32> to vector<4xf32>
    %491 = vector.shape_cast %490 : vector<4xf32> to vector<4x1xf32>
    %492 = vector.broadcast %491 : vector<4x1xf32> to vector<4x16xf32>
    %493 = arith.cmpf oeq, %489, %492 : vector<4x16xf32>
    %c16_i32_113 = arith.constant 16 : i32
    %494 = vector.broadcast %c16_i32_113 : i32 to vector<4x16xi32>
    %495 = arith.select %493, %249, %494 : vector<4x16xi1>, vector<4x16xi32>
    %cst_114 = arith.constant dense<2147483647> : vector<4xi32>
    %496 = vector.multi_reduction <minsi>, %495, %cst_114 [1] : vector<4x16xi32> to vector<4xi32>
    %497 = vector.shape_cast %496 : vector<4xi32> to vector<4x1xi32>
    %498 = arith.sitofp %497 : vector<4x1xi32> to vector<4x1xf32>
    %c5 = arith.constant 5 : index
    %499 = memref.load %arg0[%c5] : memref<8xi32, #tpu.memory_space<smem>>
    %c0_115 = arith.constant 0 : index
    %c5_116 = arith.constant 5 : index
    %500 = vector.load %arg1[%c0_115, %c5_116] : memref<4x8xi32, #tpu.memory_space<vmem>>, vector<4x1xi32>
    %c0_i32_117 = arith.constant 0 : i32
    %501 = arith.cmpi sgt, %499, %c0_i32_117 : i32
    %502 = arith.select %501, %500, %497 : vector<4x1xi32>
    %503 = vector.broadcast %502 : vector<4x1xi32> to vector<4x16xi32>
    %504 = arith.cmpi eq, %249, %503 : vector<4x16xi32>
    %505 = arith.extui %504 : vector<4x16xi1> to vector<4x16xi32>
    %506 = arith.sitofp %505 : vector<4x16xi32> to vector<4x16xf32>
    %cst_118 = arith.constant dense<0.000000e+00> : vector<4x128xf32>
    %507 = tpu.matmul %506, %244, %cst_118 {dimension_numbers = #tpu.dot_dimension_numbers<[1], [0], [0], [1], [0, 0, 1, 1], [], []>} : vector<4x16xf32>, vector<16x128xf32>, vector<4x128xf32> -> vector<4x128xf32>
    %cst_119 = arith.constant dense<0.000000e+00> : vector<4x128xf32>
    %508 = tpu.matmul %486, %245, %cst_119 {dimension_numbers = #tpu.dot_dimension_numbers<[1], [0], [0], [1], [0, 0, 1, 1], [], []>} : vector<4x32xf32>, vector<32x128xf32>, vector<4x128xf32> -> vector<4x128xf32>
    %509 = arith.addf %507, %508 : vector<4x128xf32>
    %510 = vector.broadcast %246 : vector<1x128xf32> to vector<4x128xf32>
    %511 = arith.addf %509, %510 : vector<4x128xf32>
    %512 = vector.extract_strided_slice %511 {offsets = [0, 0], sizes = [4, 32], strides = [1, 1]} : vector<4x128xf32> to vector<4x32xf32>
    %513 = arith.negf %512 : vector<4x32xf32>
    %514 = math.exp %513 : vector<4x32xf32>
    %cst_120 = arith.constant 1.000000e+00 : f32
    %515 = vector.broadcast %cst_120 : f32 to vector<4x32xf32>
    %516 = arith.addf %515, %514 : vector<4x32xf32>
    %517 = arith.divf %515, %516 : vector<4x32xf32>
    %518 = vector.extract_strided_slice %511 {offsets = [0, 32], sizes = [4, 32], strides = [1, 1]} : vector<4x128xf32> to vector<4x32xf32>
    %519 = arith.negf %518 : vector<4x32xf32>
    %520 = math.exp %519 : vector<4x32xf32>
    %cst_121 = arith.constant 1.000000e+00 : f32
    %521 = vector.broadcast %cst_121 : f32 to vector<4x32xf32>
    %522 = arith.addf %521, %520 : vector<4x32xf32>
    %523 = arith.divf %521, %522 : vector<4x32xf32>
    %524 = vector.extract_strided_slice %511 {offsets = [0, 64], sizes = [4, 32], strides = [1, 1]} : vector<4x128xf32> to vector<4x32xf32>
    %525 = math.tanh %524 : vector<4x32xf32>
    %526 = vector.extract_strided_slice %511 {offsets = [0, 96], sizes = [4, 32], strides = [1, 1]} : vector<4x128xf32> to vector<4x32xf32>
    %527 = arith.negf %526 : vector<4x32xf32>
    %528 = math.exp %527 : vector<4x32xf32>
    %cst_122 = arith.constant 1.000000e+00 : f32
    %529 = vector.broadcast %cst_122 : f32 to vector<4x32xf32>
    %530 = arith.addf %529, %528 : vector<4x32xf32>
    %531 = arith.divf %529, %530 : vector<4x32xf32>
    %532 = arith.mulf %523, %484 : vector<4x32xf32>
    %533 = arith.mulf %517, %525 : vector<4x32xf32>
    %534 = arith.addf %532, %533 : vector<4x32xf32>
    %535 = math.tanh %534 : vector<4x32xf32>
    %536 = arith.mulf %531, %535 : vector<4x32xf32>
    %cst_123 = arith.constant dense<0.000000e+00> : vector<4x16xf32>
    %537 = tpu.matmul %536, %247, %cst_123 {dimension_numbers = #tpu.dot_dimension_numbers<[1], [0], [0], [1], [0, 0, 1, 1], [], []>} : vector<4x32xf32>, vector<32x16xf32>, vector<4x16xf32> -> vector<4x16xf32>
    %538 = vector.broadcast %248 : vector<1x16xf32> to vector<4x16xf32>
    %539 = arith.addf %537, %538 : vector<4x16xf32>
    %cst_124 = arith.constant dense<0xFF800000> : vector<4xf32>
    %540 = vector.multi_reduction <maximumf>, %539, %cst_124 [1] : vector<4x16xf32> to vector<4xf32>
    %541 = vector.shape_cast %540 : vector<4xf32> to vector<4x1xf32>
    %542 = vector.broadcast %541 : vector<4x1xf32> to vector<4x16xf32>
    %543 = arith.cmpf oeq, %539, %542 : vector<4x16xf32>
    %c16_i32_125 = arith.constant 16 : i32
    %544 = vector.broadcast %c16_i32_125 : i32 to vector<4x16xi32>
    %545 = arith.select %543, %249, %544 : vector<4x16xi1>, vector<4x16xi32>
    %cst_126 = arith.constant dense<2147483647> : vector<4xi32>
    %546 = vector.multi_reduction <minsi>, %545, %cst_126 [1] : vector<4x16xi32> to vector<4xi32>
    %547 = vector.shape_cast %546 : vector<4xi32> to vector<4x1xi32>
    %548 = arith.sitofp %547 : vector<4x1xi32> to vector<4x1xf32>
    %c6 = arith.constant 6 : index
    %549 = memref.load %arg0[%c6] : memref<8xi32, #tpu.memory_space<smem>>
    %c0_127 = arith.constant 0 : index
    %c6_128 = arith.constant 6 : index
    %550 = vector.load %arg1[%c0_127, %c6_128] : memref<4x8xi32, #tpu.memory_space<vmem>>, vector<4x1xi32>
    %c0_i32_129 = arith.constant 0 : i32
    %551 = arith.cmpi sgt, %549, %c0_i32_129 : i32
    %552 = arith.select %551, %550, %547 : vector<4x1xi32>
    %553 = vector.broadcast %552 : vector<4x1xi32> to vector<4x16xi32>
    %554 = arith.cmpi eq, %249, %553 : vector<4x16xi32>
    %555 = arith.extui %554 : vector<4x16xi1> to vector<4x16xi32>
    %556 = arith.sitofp %555 : vector<4x16xi32> to vector<4x16xf32>
    %cst_130 = arith.constant dense<0.000000e+00> : vector<4x128xf32>
    %557 = tpu.matmul %556, %244, %cst_130 {dimension_numbers = #tpu.dot_dimension_numbers<[1], [0], [0], [1], [0, 0, 1, 1], [], []>} : vector<4x16xf32>, vector<16x128xf32>, vector<4x128xf32> -> vector<4x128xf32>
    %cst_131 = arith.constant dense<0.000000e+00> : vector<4x128xf32>
    %558 = tpu.matmul %536, %245, %cst_131 {dimension_numbers = #tpu.dot_dimension_numbers<[1], [0], [0], [1], [0, 0, 1, 1], [], []>} : vector<4x32xf32>, vector<32x128xf32>, vector<4x128xf32> -> vector<4x128xf32>
    %559 = arith.addf %557, %558 : vector<4x128xf32>
    %560 = vector.broadcast %246 : vector<1x128xf32> to vector<4x128xf32>
    %561 = arith.addf %559, %560 : vector<4x128xf32>
    %562 = vector.extract_strided_slice %561 {offsets = [0, 0], sizes = [4, 32], strides = [1, 1]} : vector<4x128xf32> to vector<4x32xf32>
    %563 = arith.negf %562 : vector<4x32xf32>
    %564 = math.exp %563 : vector<4x32xf32>
    %cst_132 = arith.constant 1.000000e+00 : f32
    %565 = vector.broadcast %cst_132 : f32 to vector<4x32xf32>
    %566 = arith.addf %565, %564 : vector<4x32xf32>
    %567 = arith.divf %565, %566 : vector<4x32xf32>
    %568 = vector.extract_strided_slice %561 {offsets = [0, 32], sizes = [4, 32], strides = [1, 1]} : vector<4x128xf32> to vector<4x32xf32>
    %569 = arith.negf %568 : vector<4x32xf32>
    %570 = math.exp %569 : vector<4x32xf32>
    %cst_133 = arith.constant 1.000000e+00 : f32
    %571 = vector.broadcast %cst_133 : f32 to vector<4x32xf32>
    %572 = arith.addf %571, %570 : vector<4x32xf32>
    %573 = arith.divf %571, %572 : vector<4x32xf32>
    %574 = vector.extract_strided_slice %561 {offsets = [0, 64], sizes = [4, 32], strides = [1, 1]} : vector<4x128xf32> to vector<4x32xf32>
    %575 = math.tanh %574 : vector<4x32xf32>
    %576 = vector.extract_strided_slice %561 {offsets = [0, 96], sizes = [4, 32], strides = [1, 1]} : vector<4x128xf32> to vector<4x32xf32>
    %577 = arith.negf %576 : vector<4x32xf32>
    %578 = math.exp %577 : vector<4x32xf32>
    %cst_134 = arith.constant 1.000000e+00 : f32
    %579 = vector.broadcast %cst_134 : f32 to vector<4x32xf32>
    %580 = arith.addf %579, %578 : vector<4x32xf32>
    %581 = arith.divf %579, %580 : vector<4x32xf32>
    %582 = arith.mulf %573, %534 : vector<4x32xf32>
    %583 = arith.mulf %567, %575 : vector<4x32xf32>
    %584 = arith.addf %582, %583 : vector<4x32xf32>
    %585 = math.tanh %584 : vector<4x32xf32>
    %586 = arith.mulf %581, %585 : vector<4x32xf32>
    %cst_135 = arith.constant dense<0.000000e+00> : vector<4x16xf32>
    %587 = tpu.matmul %586, %247, %cst_135 {dimension_numbers = #tpu.dot_dimension_numbers<[1], [0], [0], [1], [0, 0, 1, 1], [], []>} : vector<4x32xf32>, vector<32x16xf32>, vector<4x16xf32> -> vector<4x16xf32>
    %588 = vector.broadcast %248 : vector<1x16xf32> to vector<4x16xf32>
    %589 = arith.addf %587, %588 : vector<4x16xf32>
    %cst_136 = arith.constant dense<0xFF800000> : vector<4xf32>
    %590 = vector.multi_reduction <maximumf>, %589, %cst_136 [1] : vector<4x16xf32> to vector<4xf32>
    %591 = vector.shape_cast %590 : vector<4xf32> to vector<4x1xf32>
    %592 = vector.broadcast %591 : vector<4x1xf32> to vector<4x16xf32>
    %593 = arith.cmpf oeq, %589, %592 : vector<4x16xf32>
    %c16_i32_137 = arith.constant 16 : i32
    %594 = vector.broadcast %c16_i32_137 : i32 to vector<4x16xi32>
    %595 = arith.select %593, %249, %594 : vector<4x16xi1>, vector<4x16xi32>
    %cst_138 = arith.constant dense<2147483647> : vector<4xi32>
    %596 = vector.multi_reduction <minsi>, %595, %cst_138 [1] : vector<4x16xi32> to vector<4xi32>
    %597 = vector.shape_cast %596 : vector<4xi32> to vector<4x1xi32>
    %598 = arith.sitofp %597 : vector<4x1xi32> to vector<4x1xf32>
    %599 = tpu.concatenate %251, %289, %339, %389, %439, %489, %539, %589 in 1 : vector<4x16xf32>, vector<4x16xf32>, vector<4x16xf32>, vector<4x16xf32>, vector<4x16xf32>, vector<4x16xf32>, vector<4x16xf32>, vector<4x16xf32> -> vector<4x128xf32>
    %c0_139 = arith.constant 0 : index
    %c0_140 = arith.constant 0 : index
    %600 = vector.load %arg10[%c0_139, %c0_140] : memref<4x128xf32, #tpu.memory_space<vmem>>, vector<4x128xf32>
    tpu.vector_store %arg10[%c0_139, %c0_140], %599 {strides = array<i32>} : memref<4x128xf32, #tpu.memory_space<vmem>>, vector<4x128xf32>,
    %601 = tpu.concatenate %252, %298, %348, %398, %448, %498, %548, %598 in 1 : vector<4x1xf32>, vector<4x1xf32>, vector<4x1xf32>, vector<4x1xf32>, vector<4x1xf32>, vector<4x1xf32>, vector<4x1xf32>, vector<4x1xf32> -> vector<4x8xf32>
    %c0_141 = arith.constant 0 : index
    %c0_142 = arith.constant 0 : index
    %602 = vector.load %arg11[%c0_141, %c0_142] : memref<4x8xf32, #tpu.memory_space<vmem>>, vector<4x8xf32>
    tpu.vector_store %arg11[%c0_141, %c0_142], %601 {strides = array<i32>} : memref<4x8xf32, #tpu.memory_space<vmem>>, vector<4x8xf32>,
    return
  }
}

</mosaic_0001>

<bundles_post_ra>
// kernel: seq2seq_forward.1
= control target key start
LH: loop header
LB: loop body
LE: loop exit
PB: predicated region body
PF: predicated region fallthrough
CT: control target
= control target key end

     0   :  { %17 = vsyncpa [#allocation4], 0  ;;  %s4324_s0 = inlined_call_operand.vmem [shape: s32[8], index: 0, kind: input, shape index: {}]   ;;  %s4325_s1 = inlined_call_operand.vmem [shape: s32[4,8], index: 1, kind: input, shape index: {}]   ;;  %s4326_s2 = inlined_call_operand.vmem [shape: f32[32,128], index: 2, kind: input, shape index: {}]   ;;  %s4327_s3 = inlined_call_operand.vmem [shape: f32[32,128], index: 3, kind: input, shape index: {}]   ;;  %s4328_s4 = inlined_call_operand.vmem [shape: f32[1,128], index: 4, kind: input, shape index: {}]   ;;  %s4329_s5 = inlined_call_operand.vmem [shape: f32[16,128], index: 5, kind: input, shape index: {}]   ;;  %s4330_s6 = inlined_call_operand.vmem [shape: f32[32,128], index: 6, kind: input, shape index: {}]   ;;  %s4331_s7 = inlined_call_operand.vmem [shape: f32[1,128], index: 7, kind: input, shape index: {}]   ;;  %s4332_s8 = inlined_call_operand.vmem [shape: f32[32,16], index: 8, kind: input, shape index: {}]   ;;  %s4333_s9 = inlined_call_operand.vmem [shape: f32[1,16], index: 9, kind: input, shape index: {}]   ;;  %s4334_s10 = inlined_call_operand.vmem [shape: f32[4,128], index: 10, kind: output, shape index: {0}]   ;;  %s4335_s11 = inlined_call_operand.hbm [shape: f32[4,8], index: 11, kind: output, shape index: {1}]  }
   0x1   :  { %18 = vsyncpa [#allocation3], 0  ;;  %s25_s19 = sshll.u32 %s4324_s0, 4  ;;  %s26_s19 = int_to_ptr.vmem [resolvable:$true] %s25_s19 }
   0x2   :  { %s3695_s20 = scalar_lea.vmem %s26_s19, 16  ;;  %p3700_p1 = scmp.lt.s32.totalorder %s26_s19, %s26_s19 }
   0x3   :  { %p3696_p0 = scmp.ne.s32.totalorder %s26_s19, %s3695_s20  ;;  %p3701_p2 = scmp.lt.s32.totalorder %s3695_s20, %s3695_s20 }
   0x5   :  { %p3702_p3 = por %p3701_p2, %p3700_p1 }
   0x7   :  { %p3703_p4 = pnand %p3702_p3, %p3696_p0 }
   0x9   :  { %3706 = shalt.err (!%p3703_p4)
}
   0xa   :  { %s3733_s21 = smov [#allocation2]  }
   0xb   :  { %28 = dma.vmem_to_smem %s26_s19, 16, %s3733_s21, [#allocation4]  }
   0xc   :  { %3729 = dma.done.wait [#allocation4], 16  }
   0xd   :  { %3730 = vsyncadd [#allocation4], 4294967280 }
   0xe   :  { %50 = sfence }
   0xf   :  { %v51_v0 = vld [vmem:[%s4327_s3] sm:$0xff]  ;;  %v52_v1 = vld [vmem:[%s4327_s3 + $0x8] sm:$0xff]  ;;  %v53_v2 = vld [vmem:[%s4327_s3 + $0x10] sm:$0xff]  ;;  %v3734_v3 = vmov 0.0|0.0   ;;  %vm3735_vm0 = vmmov 0   ;;  %v3736_v6 = vmov 0.0  }
  0x10   :  { %3394 = vmatprep.subr.bf16.mxu0 %v3734_v3  ;;  %v3825_v4 = vpack.c.bf16 %v52_v1, %v51_v0  ;;  %v54_v5 = vld [vmem:[%s4327_s3 + $0x18] sm:$0xff]  ;;  %3111 = vmatprep.mubr.msk.f32.mxu0 %vm3735_vm0, %v3736_v6  ;;  %v56_v8 = vld [vmem:[%s4326_s2] sm:$0xf]  ;;  %s3737_s13 = smov 64   ;;  %vm57_vm1 = vcmask 261120   ;;  %vm973_vm2 = vcmask 130048  }
  0x11   :  { %3400 = vmatprep.subr.bf16.mxu1 %v3734_v3  ;;  %3122 = vmatprep.mubr.msk.f32.mxu1 %vm3735_vm0, %v3736_v6  ;;  %v3836_v7 = vpack.c.bf16 %v54_v5, %v53_v2  ;;  %v3858_v9 = vld [vmem:[%s4328_s4] ss:$0 sm:$0xff]  ;;  %s3738_s4 = smov 32   ;;  %v163_v28 = vld [vmem:[%s4326_s2 + $0x4] sm:$0xf]  ;;  %vm1159_vm4 = vcmask 125952  }
  0x12   :  { %3396 = vmatpush3.bf16.msra.mxu0 %v3825_v4  ;;  %3402 = vmatpush3.bf16.msra.mxu1 %v3825_v4  ;;  %v265_v47 = vld [vmem:[%s4326_s2 + $0x8] sm:$0xf]  ;;  %v367_v2 = vld [vmem:[%s4326_s2 + $0xc] sm:$0xf]  ;;  %s2942_s28 = sld [smem:[#allocation2 + $0x2]]  ;;  %vm2878_vm12 = vcmask 7168  }
  0x13   :  { %3397 = vmatprep.subr.bf16.mxu0 %v3734_v3  ;;  %3403 = vmatprep.subr.bf16.mxu1 %v3734_v3  ;;  %vm2880_vm13 = vcmask 15360   ;;  %s2948_s29 = sld [smem:[#allocation2 + $0x3]]  ;;  %s2954_s12 = sld [smem:[#allocation2 + $0x4]] }
  0x14   :  { %s2960_s15 = sld [smem:[#allocation2 + $0x5]]  ;;  %s2966_s17 = sld [smem:[#allocation2 + $0x6]] }
  0x16   :  { %3399 = vmatpush3.bf16.msra.mxu0 %v3836_v7  ;;  %3405 = vmatpush3.bf16.msra.mxu1 %v3836_v7 }
  0x17   :  { %3406 = vmatprep.subr.bf16.mxu0 %v3734_v3  ;;  %3412 = vmatprep.subr.bf16.mxu1 %v3734_v3 }
  0x18   :  { %p1458_p6 = scmp.gt.s32.totalorder %s2942_s28, 0 }
  0x19   :  { %3112 = vmatmul.mubr.f32.vlgmr.msra.gmra.mrb[0].mxu0 %v3736_v6  ;;  %p1734_p7 = scmp.gt.s32.totalorder %s2948_s29, 0  ;;  %p2010_p8 = scmp.gt.s32.totalorder %s2954_s12, 0 }
  0x1a   :  { %3408 = vmatpush3.bf16.msra.mxu0 %v3825_v4  ;;  %3133 = vmatprep.mubr.msk.f32.mxu0 %vm3735_vm0, %v3736_v6  ;;  %s1459_s3 = scalar_select %p1458_p6, 1, 0 }
  0x1b   :  { %3409 = vmatprep.subr.bf16.mxu0 %v3734_v3  ;;  %s1735_s30 = scalar_select %p1734_p7, 1, 0 }
  0x1c   :  { %s2011_s14 = scalar_select %p2010_p8, 1, 0 }
  0x1d   :  { %p2286_p9 = scmp.gt.s32.totalorder %s2960_s15, 0  ;;  %p2562_p10 = scmp.gt.s32.totalorder %s2966_s17, 0 }
  0x1e   :  { %3411 = vmatpush3.bf16.msra.mxu0 %v3836_v7 }
  0x1f   :  { %3418 = vmatprep.subr.bf16.mxu0 %v3734_v3  ;;  %s2287_s16 = scalar_select %p2286_p9, 1, 0 }
  0x20   :  { %s2563_s18 = scalar_select %p2562_p10, 1, 0 }
  0xec   :  { %v127_v10 = vpop.f32.mrb[0].mxu0 }
  0xed   :  { %v131_v11 = vadd.f32 %v127_v10, %v56_v8  ;;  %v3113_v12 = vpop.f32.mrb[1].mxu0 }
  0xef   :  { %v138_v13 = vadd.f32 %v3858_v9, %v131_v11 }
  0xf1   :  { %3574 = vtanh.f32 %v138_v13  ;;  %v2914_v15 = vmul.f32 -1.442695, %v138_v13 }
  0xf3   :  { %3576 = vpow2.f32 %v2914_v15 }
  0xfb   :  { %v3575_v14 = vpop.eup %3574 }
  0xfc   :  { %148 = vrot.lane.b32.xlu0 %v3575_v14, %s3737_s13 }
  0xfd   :  { %v3577_v16 = vpop.eup %3576 }
  0xfe   :  { %v142_v17 = vadd.f32 1.0, %v3577_v16 }
 0x100   :  { %3578 = vrcp.f32 %v142_v17 }
 0x10a   :  { %v3579_v18 = vpop.eup %3578 }
 0x10b   :  { %v146_v21 = vmul.f32 0.0, %v3579_v18 }
 0x16e   :  { %v149_v19 = vpop.permute.xlu0 %148 }
 0x16f   :  { %v151_v20 = vmul.f32 %v3579_v18, %v149_v19 }
 0x171   :  { %153 = vrot.lane.b32.xlu0 %v151_v20, %s3738_s4 }
 0x1e3   :  { %v154_v22 = vpop.permute.xlu0 %153 }
 0x1e4   :  { %v156_v23 = vadd.f32 %v154_v22, %v146_v21 }
 0x1e6   :  { %3580 = vtanh.f32 %v156_v23 }
 0x1f0   :  { %v3581_v24 = vpop.eup %3580 }
 0x1f1   :  { %159 = vrot.lane.b32.xlu1 %v3581_v24, %s3737_s13 }
 0x263   :  { %v160_v25 = vpop.permute.xlu1 %159 }
 0x264   :  { %v162_v26 = vmul.f32 %v3579_v18, %v160_v25 }
 0x266   :  { %165 = vrot.lane.b32.xlu1 %v162_v26, %s3738_s4  ;;  %v469_v26 = vld [vmem:[%s4326_s2 + $0x10] sm:$0xf] }
 0x2d8   :  { %v166_v27 = vpop.permute.xlu1 %165 }
 0x2d9   :  { %3123 = vmatmul.mubr.msk.f32.vlgmr.msra.gmra.mrb[0].mxu1 %vm57_vm1, %v166_v27 }
 0x2da   :  { %3414 = vmatpush3.bf16.msra.mxu1 %v3825_v4  ;;  %3144 = vmatprep.mubr.msk.f32.mxu1 %vm3735_vm0, %v3736_v6 }
 0x2db   :  { %3415 = vmatprep.subr.bf16.mxu1 %v3734_v3 }
 0x2de   :  { %3417 = vmatpush3.bf16.msra.mxu1 %v3836_v7 }
 0x2df   :  { %3424 = vmatprep.subr.bf16.mxu1 %v3734_v3 }
 0x3ac   :  { %v235_v29 = vpop.f32.mrb[0].mxu1 }
 0x3ad   :  { %v239_v30 = vadd.f32 %v235_v29, %v163_v28  ;;  %v3124_v31 = vpop.f32.mrb[1].mxu1 }
 0x3af   :  { %v240_v32 = vadd.f32 %v3858_v9, %v239_v30 }
 0x3b1   :  { %3582 = vtanh.f32 %v240_v32  ;;  %v2916_v34 = vmul.f32 -1.442695, %v240_v32 }
 0x3b3   :  { %3584 = vpow2.f32 %v2916_v34 }
 0x3bb   :  { %v3583_v33 = vpop.eup %3582 }
 0x3bc   :  { %250 = vrot.lane.b32.xlu0 %v3583_v33, %s3737_s13 }
 0x3bd   :  { %v3585_v35 = vpop.eup %3584 }
 0x3be   :  { %v244_v36 = vadd.f32 1.0, %v3585_v35 }
 0x3c0   :  { %3586 = vrcp.f32 %v244_v36 }
 0x3ca   :  { %v3587_v37 = vpop.eup %3586 }
 0x3cb   :  { %v248_v40 = vmul.f32 %v3587_v37, %v156_v23 }
 0x42e   :  { %v251_v38 = vpop.permute.xlu0 %250 }
 0x42f   :  { %v253_v39 = vmul.f32 %v3587_v37, %v251_v38 }
 0x431   :  { %255 = vrot.lane.b32.xlu1 %v253_v39, %s3738_s4 }
 0x4a3   :  { %v256_v41 = vpop.permute.xlu1 %255 }
 0x4a4   :  { %v258_v42 = vadd.f32 %v256_v41, %v248_v40 }
 0x4a6   :  { %3588 = vtanh.f32 %v258_v42 }
 0x4b0   :  { %v3589_v43 = vpop.eup %3588 }
 0x4b1   :  { %261 = vrot.lane.b32.xlu0 %v3589_v43, %s3737_s13 }
 0x523   :  { %v262_v44 = vpop.permute.xlu0 %261 }
 0x524   :  { %v264_v45 = vmul.f32 %v3587_v37, %v262_v44 }
 0x526   :  { %267 = vrot.lane.b32.xlu1 %v264_v45, %s3738_s4  ;;  %v571_v45 = vld [vmem:[%s4326_s2 + $0x14] sm:$0xf] }
 0x598   :  { %v268_v46 = vpop.permute.xlu1 %267 }
 0x599   :  { %3134 = vmatmul.mubr.msk.f32.vlgmr.msra.gmra.mrb[2].mxu0 %vm57_vm1, %v268_v46 }
 0x59a   :  { %3420 = vmatpush3.bf16.msra.mxu0 %v3825_v4  ;;  %3155 = vmatprep.mubr.msk.f32.mxu0 %vm3735_vm0, %v3736_v6 }
 0x59b   :  { %3421 = vmatprep.subr.bf16.mxu0 %v3734_v3 }
 0x59e   :  { %3423 = vmatpush3.bf16.msra.mxu0 %v3836_v7 }
 0x59f   :  { %3430 = vmatprep.subr.bf16.mxu0 %v3734_v3 }
 0x66c   :  { %v337_v48 = vpop.f32.mrb[2].mxu0 }
 0x66d   :  { %v341_v49 = vadd.f32 %v337_v48, %v265_v47  ;;  %v3135_v50 = vpop.f32.mrb[3].mxu0 }
 0x66f   :  { %v342_v51 = vadd.f32 %v3858_v9, %v341_v49 }
 0x671   :  { %3590 = vtanh.f32 %v342_v51  ;;  %v2918_v53 = vmul.f32 -1.442695, %v342_v51 }
 0x673   :  { %3592 = vpow2.f32 %v2918_v53 }
 0x67b   :  { %v3591_v52 = vpop.eup %3590 }
 0x67c   :  { %352 = vrot.lane.b32.xlu0 %v3591_v52, %s3737_s13 }
 0x67d   :  { %v3593_v54 = vpop.eup %3592 }
 0x67e   :  { %v346_v55 = vadd.f32 1.0, %v3593_v54 }
 0x680   :  { %3594 = vrcp.f32 %v346_v55 }
 0x68a   :  { %v3595_v56 = vpop.eup %3594 }
 0x68b   :  { %v350_v59 = vmul.f32 %v3595_v56, %v258_v42 }
 0x6ee   :  { %v353_v57 = vpop.permute.xlu0 %352 }
 0x6ef   :  { %v355_v58 = vmul.f32 %v3595_v56, %v353_v57 }
 0x6f1   :  { %357 = vrot.lane.b32.xlu1 %v355_v58, %s3738_s4 }
 0x763   :  { %v358_v60 = vpop.permute.xlu1 %357 }
 0x764   :  { %v360_v61 = vadd.f32 %v358_v60, %v350_v59 }
 0x766   :  { %3596 = vtanh.f32 %v360_v61 }
 0x770   :  { %v3597_v62 = vpop.eup %3596 }
 0x771   :  { %363 = vrot.lane.b32.xlu0 %v3597_v62, %s3737_s13  ;;  %v673_v62 = vld [vmem:[%s4326_s2 + $0x18] sm:$0xf] }
 0x7e3   :  { %v364_v63 = vpop.permute.xlu0 %363 }
 0x7e4   :  { %v366_v0 = vmul.f32 %v3595_v56, %v364_v63 }
 0x7e6   :  { %369 = vrot.lane.b32.xlu1 %v366_v0, %s3738_s4 }
 0x858   :  { %v370_v1 = vpop.permute.xlu1 %369 }
 0x859   :  { %3145 = vmatmul.mubr.msk.f32.vlgmr.msra.gmra.mrb[2].mxu1 %vm57_vm1, %v370_v1 }
 0x85a   :  { %3426 = vmatpush3.bf16.msra.mxu1 %v3825_v4  ;;  %3166 = vmatprep.mubr.msk.f32.mxu1 %vm3735_vm0, %v3736_v6 }
 0x85b   :  { %3427 = vmatprep.subr.bf16.mxu1 %v3734_v3 }
 0x85e   :  { %3429 = vmatpush3.bf16.msra.mxu1 %v3836_v7 }
 0x85f   :  { %3436 = vmatprep.subr.bf16.mxu1 %v3734_v3 }
 0x92c   :  { %v439_v5 = vpop.f32.mrb[2].mxu1 }
 0x92d   :  { %v443_v8 = vadd.f32 %v439_v5, %v367_v2  ;;  %v3146_v10 = vpop.f32.mrb[3].mxu1 }
 0x92f   :  { %v444_v11 = vadd.f32 %v3858_v9, %v443_v8 }
 0x931   :  { %3598 = vtanh.f32 %v444_v11  ;;  %v2920_v13 = vmul.f32 -1.442695, %v444_v11 }
 0x933   :  { %3600 = vpow2.f32 %v2920_v13 }
 0x93b   :  { %v3599_v12 = vpop.eup %3598 }
 0x93c   :  { %454 = vrot.lane.b32.xlu0 %v3599_v12, %s3737_s13 }
 0x93d   :  { %v3601_v14 = vpop.eup %3600 }
 0x93e   :  { %v448_v15 = vadd.f32 1.0, %v3601_v14 }
 0x940   :  { %3602 = vrcp.f32 %v448_v15 }
 0x94a   :  { %v3603_v16 = vpop.eup %3602 }
 0x94b   :  { %v452_v19 = vmul.f32 %v3603_v16, %v360_v61 }
 0x9ae   :  { %v455_v17 = vpop.permute.xlu0 %454 }
 0x9af   :  { %v457_v18 = vmul.f32 %v3603_v16, %v455_v17 }
 0x9b1   :  { %459 = vrot.lane.b32.xlu1 %v457_v18, %s3738_s4 }
 0xa23   :  { %v460_v20 = vpop.permute.xlu1 %459 }
 0xa24   :  { %v462_v21 = vadd.f32 %v460_v20, %v452_v19 }
 0xa26   :  { %3604 = vtanh.f32 %v462_v21 }
 0xa30   :  { %v3605_v22 = vpop.eup %3604 }
 0xa31   :  { %465 = vrot.lane.b32.xlu0 %v3605_v22, %s3737_s13  ;;  %v775_v22 = vld [vmem:[%s4326_s2 + $0x1c] sm:$0xf] }
 0xaa3   :  { %v466_v23 = vpop.permute.xlu0 %465 }
 0xaa4   :  { %v468_v24 = vmul.f32 %v3603_v16, %v466_v23 }
 0xaa6   :  { %471 = vrot.lane.b32.xlu1 %v468_v24, %s3738_s4 }
 0xb18   :  { %v472_v25 = vpop.permute.xlu1 %471 }
 0xb19   :  { %3156 = vmatmul.mubr.msk.f32.vlgmr.msra.gmra.mrb[4].mxu0 %vm57_vm1, %v472_v25 }
 0xb1a   :  { %3432 = vmatpush3.bf16.msra.mxu0 %v3825_v4  ;;  %3177 = vmatprep.mubr.msk.f32.mxu0 %vm3735_vm0, %v3736_v6 }
 0xb1b   :  { %3433 = vmatprep.subr.bf16.mxu0 %v3734_v3 }
 0xb1e   :  { %3435 = vmatpush3.bf16.msra.mxu0 %v3836_v7 }
 0xb1f   :  { %3442 = vmatprep.subr.bf16.mxu0 %v3734_v3 }
 0xbec   :  { %v541_v27 = vpop.f32.mrb[4].mxu0 }
 0xbed   :  { %v545_v28 = vadd.f32 %v541_v27, %v469_v26  ;;  %v3157_v29 = vpop.f32.mrb[5].mxu0 }
 0xbef   :  { %v546_v30 = vadd.f32 %v3858_v9, %v545_v28 }
 0xbf1   :  { %3606 = vtanh.f32 %v546_v30  ;;  %v2922_v32 = vmul.f32 -1.442695, %v546_v30 }
 0xbf3   :  { %3608 = vpow2.f32 %v2922_v32 }
 0xbfb   :  { %v3607_v31 = vpop.eup %3606 }
 0xbfc   :  { %556 = vrot.lane.b32.xlu0 %v3607_v31, %s3737_s13 }
 0xbfd   :  { %v3609_v33 = vpop.eup %3608 }
 0xbfe   :  { %v550_v34 = vadd.f32 1.0, %v3609_v33 }
 0xc00   :  { %3610 = vrcp.f32 %v550_v34  ;;  %v3739_v34 = vmov 0  }
 0xc01   :  { %3566 = vset.pattern.permute.xlu1 %v3739_v34 }
 0xc0a   :  { %v3611_v35 = vpop.eup %3610 }
 0xc0b   :  { %v554_v38 = vmul.f32 %v3611_v35, %v462_v21 }
 0xc6e   :  { %v557_v36 = vpop.permute.xlu0 %556 }
 0xc6f   :  { %v559_v37 = vmul.f32 %v3611_v35, %v557_v36 }
 0xc71   :  { %561 = vrot.lane.b32.xlu1 %v559_v37, %s3738_s4 }
 0xce3   :  { %v562_v39 = vpop.permute.xlu1 %561 }
 0xce4   :  { %v564_v40 = vadd.f32 %v562_v39, %v554_v38  ;;  %v879_v38 = vld [vmem:[%s4330_s6] sm:$0xff]  ;;  %v880_v39 = vld [vmem:[%s4330_s6 + $0x8] sm:$0xff] }
 0xce6   :  { %3612 = vtanh.f32 %v564_v40 }
 0xcf0   :  { %v3613_v41 = vpop.eup %3612 }
 0xcf1   :  { %567 = vrot.lane.b32.xlu0 %v3613_v41, %s3737_s13  ;;  %v3975_v41 = vpack.c.bf16 %v880_v39, %v879_v38 }
 0xd63   :  { %v568_v42 = vpop.permute.xlu0 %567 }
 0xd64   :  { %v570_v43 = vmul.f32 %v3611_v35, %v568_v42  ;;  %v878_v42 = vld [vmem:[%s4329_s5 + $0x8] sm:$0xff] }
 0xd66   :  { %573 = vrot.lane.b32.xlu1 %v570_v43, %s3738_s4  ;;  %v881_v43 = vld [vmem:[%s4330_s6 + $0x10] sm:$0xff] }
 0xdd8   :  { %v574_v44 = vpop.permute.xlu1 %573 }
 0xdd9   :  { %3167 = vmatmul.mubr.msk.f32.vlgmr.msra.gmra.mrb[4].mxu1 %vm57_vm1, %v574_v44  ;;  %v882_v44 = vld [vmem:[%s4330_s6 + $0x18] sm:$0xff]  ;;  %s3748_s6 = smov 96  }
 0xdda   :  { %3438 = vmatpush3.bf16.msra.mxu1 %v3825_v4  ;;  %3188 = vmatprep.mubr.msk.f32.mxu1 %vm3735_vm0, %v3736_v6 }
 0xddb   :  { %3439 = vmatprep.subr.bf16.mxu1 %v3734_v3 }
 0xdde   :  { %3441 = vmatpush3.bf16.msra.mxu1 %v3836_v7 }
 0xddf   :  { %3448 = vmatprep.subr.bf16.mxu1 %v3734_v3 }
 0xeac   :  { %v643_v46 = vpop.f32.mrb[4].mxu1 }
 0xead   :  { %v647_v47 = vadd.f32 %v643_v46, %v571_v45  ;;  %v3168_v48 = vpop.f32.mrb[5].mxu1  ;;  %v3989_v46 = vpack.c.bf16 %v882_v44, %v881_v43 }
 0xeaf   :  { %v648_v49 = vadd.f32 %v3858_v9, %v647_v47  ;;  %v889_v47 = vlaneseq }
 0xeb1   :  { %3614 = vtanh.f32 %v648_v49  ;;  %v2924_v50 = vmul.f32 -1.442695, %v648_v49  ;;  %v3997_v49 = vand.u32 127, %v889_v47 }
 0xeb3   :  { %3616 = vpow2.f32 %v2924_v50 }
 0xebb   :  { %v3615_v4 = vpop.eup %3614 }
 0xebc   :  { %658 = vrot.lane.b32.xlu0 %v3615_v4, %s3737_s13 }
 0xebd   :  { %v3617_v51 = vpop.eup %3616 }
 0xebe   :  { %v652_v52 = vadd.f32 1.0, %v3617_v51 }
 0xec0   :  { %3618 = vrcp.f32 %v652_v52 }
 0xeca   :  { %v3619_v7 = vpop.eup %3618 }
 0xecb   :  { %v656_v55 = vmul.f32 %v3619_v7, %v564_v40  ;;  %v877_v40 = vld [vmem:[%s4329_s5] sm:$0xff]  ;;  %s3747_s5 = smov 48  }
 0xecc   :  { %v3986_v45 = vpack.c.bf16 %v878_v42, %v877_v40 }
 0xf2e   :  { %v659_v53 = vpop.permute.xlu0 %658 }
 0xf2f   :  { %v661_v54 = vmul.f32 %v3619_v7, %v659_v53 }
 0xf31   :  { %663 = vrot.lane.b32.xlu1 %v661_v54, %s3738_s4 }
 0xfa3   :  { %v664_v56 = vpop.permute.xlu1 %663 }
 0xfa4   :  { %v666_v57 = vadd.f32 %v664_v56, %v656_v55  ;;  %v4015_v55 = vld [vmem:[%s4331_s7] ss:$0 sm:$0xff]  ;;  %s3749_s7 = smov 80  }
 0xfa6   :  { %3620 = vtanh.f32 %v666_v57 }
 0xfb0   :  { %v3621_v58 = vpop.eup %3620 }
 0xfb1   :  { %669 = vrot.lane.b32.xlu0 %v3621_v58, %s3737_s13 }
0x1023   :  { %v670_v59 = vpop.permute.xlu0 %669 }
0x1024   :  { %v672_v60 = vmul.f32 %v3619_v7, %v670_v59 }
0x1026   :  { %675 = vrot.lane.b32.xlu1 %v672_v60, %s3738_s4 }
0x1098   :  { %v676_v61 = vpop.permute.xlu1 %675 }
0x1099   :  { %3178 = vmatmul.mubr.msk.f32.vlgmr.msra.gmra.mrb[6].mxu0 %vm57_vm1, %v676_v61 }
0x109a   :  { %3199 = vmatprep.mubr.msk.f32.mxu0 %vm3735_vm0, %v3736_v6  ;;  %3444 = vmatpush3.bf16.msra.mxu0 %v3975_v41 }
0x109b   :  { %3445 = vmatprep.subr.bf16.mxu0 %v3734_v3 }
0x109e   :  { %3447 = vmatpush3.bf16.msra.mxu0 %v3989_v46 }
0x109f   :  { %3457 = vmatprep.subr.bf16.mxu0 %v3734_v3 }
0x116c   :  { %v745_v63 = vpop.f32.mrb[6].mxu0 }
0x116d   :  { %v749_v0 = vadd.f32 %v745_v63, %v673_v62  ;;  %v3179_v1 = vpop.f32.mrb[7].mxu0 }
0x116f   :  { %v750_v2 = vadd.f32 %v3858_v9, %v749_v0 }
0x1171   :  { %3622 = vtanh.f32 %v750_v2  ;;  %v2926_v8 = vmul.f32 -1.442695, %v750_v2 }
0x1173   :  { %3624 = vpow2.f32 %v2926_v8 }
0x117b   :  { %v3623_v5 = vpop.eup %3622 }
0x117c   :  { %760 = vrot.lane.b32.xlu0 %v3623_v5, %s3737_s13 }
0x117d   :  { %v3625_v10 = vpop.eup %3624 }
0x117e   :  { %v754_v11 = vadd.f32 1.0, %v3625_v10 }
0x1180   :  { %3626 = vrcp.f32 %v754_v11  ;;  %v884_v11 = vld [vmem:[%s4332_s8] sm:$0xff] }
0x118a   :  { %v3627_v12 = vpop.eup %3626 }
0x118b   :  { %v758_v15 = vmul.f32 %v3627_v12, %v666_v57 }
0x11ee   :  { %v761_v13 = vpop.permute.xlu0 %760 }
0x11ef   :  { %v763_v14 = vmul.f32 %v3627_v12, %v761_v13  ;;  %v886_v13 = vld [vmem:[%s4332_s8 + $0x10] sm:$0xff] }
0x11f1   :  { %765 = vrot.lane.b32.xlu1 %v763_v14, %s3738_s4 }
0x1263   :  { %v766_v16 = vpop.permute.xlu1 %765 }
0x1264   :  { %v768_v17 = vadd.f32 %v766_v16, %v758_v15  ;;  %v887_v15 = vld [vmem:[%s4332_s8 + $0x18] sm:$0xff] }
0x1265   :  { %v4038_v16 = vpack.c.bf16 %v887_v15, %v886_v13 }
0x1266   :  { %3628 = vtanh.f32 %v768_v17 }
0x1270   :  { %v3629_v18 = vpop.eup %3628 }
0x1271   :  { %771 = vrot.lane.b32.xlu0 %v3629_v18, %s3737_s13 }
0x12e3   :  { %v772_v19 = vpop.permute.xlu0 %771 }
0x12e4   :  { %v774_v20 = vmul.f32 %v3627_v12, %v772_v19  ;;  %v885_v12 = vld [vmem:[%s4332_s8 + $0x8] sm:$0xff] }
0x12e5   :  { %v4032_v14 = vpack.c.bf16 %v885_v12, %v884_v11 }
0x12e6   :  { %777 = vrot.lane.b32.xlu1 %v774_v20, %s3738_s4 }
0x1358   :  { %v778_v21 = vpop.permute.xlu1 %777 }
0x1359   :  { %3189 = vmatmul.mubr.msk.f32.vlgmr.msra.gmra.mrb[6].mxu1 %vm57_vm1, %v778_v21  ;;  %v4060_v21 = vld [vmem:[%s4333_s9] ss:$0 sm:$0xff]  ;;  %s2936_s9 = sld [smem:[#allocation2 + $0x1]] }
0x135a   :  { %3206 = vmatprep.mubr.msk.f32.mxu1 %vm3735_vm0, %v3736_v6  ;;  %3450 = vmatpush3.bf16.msra.mxu1 %v3986_v45 }
0x135b   :  { %3451 = vmatprep.subr.bf16.mxu1 %v3734_v3 }
0x135f   :  { %p1182_p5 = scmp.gt.s32.totalorder %s2936_s9, 0 }
0x1361   :  { %s1183_s27 = scalar_select %p1182_p5, 1, 0 }
0x1363   :  { %v1184_v39 = vstv %s1183_s27 }
0x1364   :  { %vm1185_vm7 = vcmp.eq.s32.totalorder %v1184_v39, 1 }
0x142c   :  { %v847_v23 = vpop.f32.mrb[6].mxu1 }
0x142d   :  { %v851_v24 = vadd.f32 %v847_v23, %v775_v22  ;;  %v3190_v25 = vpop.f32.mrb[7].mxu1 }
0x142f   :  { %v852_v26 = vadd.f32 %v3858_v9, %v851_v24  ;;  %v3963_v9 = vld [vmem:[%s4325_s1] sm:$0xf] }
0x1431   :  { %3630 = vtanh.f32 %v852_v26  ;;  %v2928_v28 = vmul.f32 -1.442695, %v852_v26 }
0x1433   :  { %3632 = vpow2.f32 %v2928_v28 }
0x143b   :  { %v3631_v27 = vpop.eup %3630 }
0x143c   :  { %862 = vrot.lane.b32.xlu0 %v3631_v27, %s3737_s13 }
0x143d   :  { %v3633_v29 = vpop.eup %3632 }
0x143e   :  { %v856_v30 = vadd.f32 1.0, %v3633_v29 }
0x1440   :  { %3634 = vrcp.f32 %v856_v30 }
0x144a   :  { %v3635_v31 = vpop.eup %3634 }
0x144b   :  { %v860_v35 = vmul.f32 %v3635_v31, %v768_v17 }
0x14ae   :  { %v863_v32 = vpop.permute.xlu0 %862 }
0x14af   :  { %v865_v33 = vmul.f32 %v3635_v31, %v863_v32 }
0x14b1   :  { %867 = vrot.lane.b32.xlu1 %v865_v33, %s3738_s4 }
0x14b5   :  { %893 = vperm.xlu1 %3566, %v3963_v9  }
0x1523   :  { %v868_v36 = vpop.permute.xlu1 %867 }
0x1524   :  { %v870_v37 = vadd.f32 %v868_v36, %v860_v35 }
0x1526   :  { %3636 = vtanh.f32 %v870_v37 }
0x1530   :  { %v3637_v48 = vpop.eup %3636 }
0x1531   :  { %873 = vrot.lane.b32.xlu0 %v3637_v48, %s3737_s13 }
0x1534   :  { %v894_v4 = vpop.permute.xlu1 %893 }
0x1535   :  { %vm895_vm3 = vcmp.eq.s32.totalorder %v3997_v49, %v894_v4 }
0x1536   :  { %v2929_v50 = vsel %vm895_vm3, 1.0, %v3736_v6 }
0x1537   :  { %3207 = vmatmul.mubr.msk.f32.vlgmr.msra.gmra.mrb[8].mxu1 %vm973_vm2, %v2929_v50 }
0x1538   :  { %3217 = vmatprep.mubr.msk.f32.mxu1 %vm3735_vm0, %v3736_v6  ;;  %3453 = vmatpush3.bf16.msra.mxu1 %v4032_v14 }
0x1539   :  { %3454 = vmatprep.subr.bf16.mxu1 %v3734_v3 }
0x153c   :  { %3456 = vmatpush3.bf16.msra.mxu1 %v4038_v16 }
0x153d   :  { %3463 = vmatprep.subr.bf16.mxu1 %v3734_v3 }
0x15a3   :  { %v874_v51 = vpop.permute.xlu0 %873 }
0x15a4   :  { %v876_v52 = vmul.f32 %v3635_v31, %v874_v51 }
0x15a6   :  { %899 = vrot.lane.b32.xlu0 %v876_v52, %s3738_s4 }
0x160a   :  { %v1043_v7 = vpop.f32.mrb[8].mxu1 }
0x160b   :  { %v3208_v53 = vpop.f32.mrb[9].mxu1 }
0x1618   :  { %v900_v54 = vpop.permute.xlu0 %899 }
0x1619   :  { %3200 = vmatmul.mubr.msk.f32.vlgmr.msra.gmra.mrb[8].mxu0 %vm57_vm1, %v900_v54 }
0x161a   :  { %3459 = vmatpush3.bf16.msra.mxu0 %v3975_v41  ;;  %3228 = vmatprep.mubr.msk.f32.mxu0 %vm3735_vm0, %v3736_v6 }
0x161b   :  { %3460 = vmatprep.subr.bf16.mxu0 %v3734_v3 }
0x161e   :  { %3462 = vmatpush3.bf16.msra.mxu0 %v3989_v46 }
0x161f   :  { %3466 = vmatprep.subr.bf16.mxu0 %v3734_v3 }
0x16ec   :  { %v969_v56 = vpop.f32.mrb[8].mxu0 }
0x16ed   :  { %v1044_v57 = vadd.f32 %v1043_v7, %v969_v56  ;;  %v3201_v58 = vpop.f32.mrb[9].mxu0 }
0x16ef   :  { %v1053_v59 = vadd.f32 %v4015_v55, %v1044_v57 }
0x16f1   :  { %3638 = vtanh.f32 %v1053_v59  ;;  %v2933_v61 = vmul.f32 -1.442695, %v1053_v59 }
0x16f3   :  { %3640 = vpow2.f32 %v2933_v61 }
0x16fb   :  { %v3639_v60 = vpop.eup %3638 }
0x16fc   :  { %1063 = vrot.lane.b32.xlu1 %v3639_v60, %s3737_s13 }
0x16fd   :  { %v3641_v62 = vpop.eup %3640 }
0x16fe   :  { %v1057_v63 = vadd.f32 1.0, %v3641_v62 }
0x1700   :  { %3642 = vrcp.f32 %v1057_v63 }
0x170a   :  { %v3643_v0 = vpop.eup %3642 }
0x170b   :  { %v1061_v5 = vmul.f32 %v3643_v0, %v870_v37  ;;  %v3740_v37 = vmov 1  }
0x170c   :  { %3567 = vset.pattern.permute.xlu1 %v3740_v37 }
0x176e   :  { %v1064_v1 = vpop.permute.xlu1 %1063 }
0x176f   :  { %v1066_v2 = vmul.f32 %v3643_v0, %v1064_v1 }
0x1771   :  { %1068 = vrot.lane.b32.xlu0 %v1066_v2, %s3738_s4 }
0x17e3   :  { %v1069_v8 = vpop.permute.xlu0 %1068 }
0x17e4   :  { %v4020_v10 = vadd.f32 %v1069_v8, %v1061_v5 }
0x17e6   :  { %3644 = vtanh.f32 %v4020_v10 }
0x17f0   :  { %v3645_v17 = vpop.eup %3644 }
0x17f1   :  { %1074 = vrot.lane.b32.xlu1 %v3645_v17, %s3737_s13 }
0x1863   :  { %v1075_v18 = vpop.permute.xlu1 %1074 }
0x1864   :  { %v1077_v19 = vmul.f32 %v3643_v0, %v1075_v18 }
0x1866   :  { %1085 = vrot.lane.b32.xlu0 %v1077_v19, %s3738_s4 }
0x18d8   :  { %v1086_v20 = vpop.permute.xlu0 %1085 }
0x18d9   :  { %3218 = vmatmul.mubr.msk.f32.vlgmr.msra.gmra.mrb[10].mxu1 %vm57_vm1, %v1086_v20  ;;  %3229 = vmatmul.mubr.msk.f32.vlgmr.msra.gmra.mrb[10].mxu0 %vm57_vm1, %v1086_v20 }
0x18da   :  { %3465 = vmatpush3.bf16.msra.mxu1 %v3986_v45  ;;  %3235 = vmatprep.mubr.msk.f32.mxu1 %vm3735_vm0, %v3736_v6 }
0x18db   :  { %3472 = vmatprep.subr.bf16.mxu1 %v3734_v3  ;;  %3468 = vmatpush3.bf16.msra.mxu0 %v4032_v14 }
0x18dc   :  { %3469 = vmatprep.subr.bf16.mxu0 %v3734_v3  ;;  %3246 = vmatprep.mubr.msk.f32.mxu0 %vm3735_vm0, %v3736_v6 }
0x18df   :  { %3471 = vmatpush3.bf16.msra.mxu0 %v4038_v16 }
0x18e0   :  { %3478 = vmatprep.subr.bf16.mxu0 %v3734_v3 }
0x19ac   :  { %v1155_v22 = vpop.f32.mrb[10].mxu1  ;;  %v1259_v23 = vpop.f32.mrb[10].mxu0 }
0x19ad   :  { %v4063_v24 = vadd.f32 %v4060_v21, %v1155_v22  ;;  %v3219_v25 = vpop.f32.mrb[11].mxu1  ;;  %v3230_v26 = vpop.f32.mrb[11].mxu0 }
0x19af   :  { %v1160_v27 = vsel %vm1159_vm4, %v4063_v24, -inf }
0x19b0   :  { %1161 = vmax.xlane.f32.xlu1 %v1160_v27 }
0x1a3d   :  { %v1162_v28 = vpop.xlane.xlu1 %1161 }
0x1a3e   :  { %vm1163_vm5 = vcmp.eq.f32.partialorder %v4063_v24, %v1162_v28  ;;  %v3741_v28 = vmov 2  }
0x1a3f   :  { %v1164_v29 = vsel %vm1163_vm5, %v3997_v49, 16 }
0x1a40   :  { %v1165_v30 = vsel %vm1159_vm4, %v1164_v29, 2147483647 }
0x1a41   :  { %v1167_v31 = vshra.s32 %v1165_v30, 16  ;;  %v1166_v33 = vand.u32 65535, %v1165_v30  ;;  %v1460_v30 = vstv %s1459_s3 }
0x1a42   :  { %vm1461_vm11 = vcmp.eq.s32.totalorder %v1460_v30, 1 }
0x1a43   :  { %v1169_v32 = vcvt.s32.f32 %v1167_v31  ;;  %v1168_v35 = vcvt.s32.f32 %v1166_v33 }
0x1a45   :  { %1170 = vmin.xlane.f32.xlu0 %v1169_v32 }
0x1ad2   :  { %v1171_v34 = vpop.xlane.xlu0 %1170 }
0x1ad3   :  { %vm1172_vm6 = vcmp.eq.f32.partialorder %v1169_v32, %v1171_v34  ;;  %v1177_v38 = vcvt.f32.s32 %v1171_v34 }
0x1ad4   :  { %v1173_v36 = vsel %vm1172_vm6, %v1168_v35, inf  ;;  %vm2882_vm6 = vcmask 23552  }
0x1ad5   :  { %1174 = vmin.xlane.f32.xlu0 %v1173_v36  ;;  %v1178_v42 = vshll.u32 %v1177_v38, 16 }
0x1b62   :  { %v1175_v40 = vpop.xlane.xlu0 %1174 }
0x1b63   :  { %v1176_v43 = vcvt.f32.s32 %v1175_v40 }
0x1b65   :  { %v4070_v44 = vadd.s32 %v1178_v42, %v1176_v43 }
0x1b67   :  { %v1186_v47 = vsel %vm1185_vm7, %v3963_v9, %v4070_v44  ;;  %v1180_v34 = vcvt.s32.f32 %v4070_v44 }
0x1b68   :  { %1188 = vperm.xlu1 %3567, %v1186_v47  }
0x1b69   :  { %v2879_v38 = vsel %vm2878_vm12, 0.0, %v1180_v34 }
0x1b6c   :  { %3568 = vset.pattern.permute.xlu1 %v3741_v28 }
0x1be7   :  { %v1189_v48 = vpop.permute.xlu1 %1188 }
0x1be8   :  { %vm1190_vm8 = vcmp.eq.s32.totalorder %v3997_v49, %v1189_v48 }
0x1be9   :  { %v2937_v4 = vsel %vm1190_vm8, 1.0, %v3736_v6 }
0x1bea   :  { %3236 = vmatmul.mubr.msk.f32.vlgmr.msra.gmra.mrb[12].mxu1 %vm973_vm2, %v2937_v4 }
0x1beb   :  { %3474 = vmatpush3.bf16.msra.mxu1 %v3975_v41  ;;  %3257 = vmatprep.mubr.msk.f32.mxu1 %vm3735_vm0, %v3736_v6 }
0x1bec   :  { %3475 = vmatprep.subr.bf16.mxu1 %v3734_v3 }
0x1bef   :  { %3477 = vmatpush3.bf16.msra.mxu1 %v3989_v46 }
0x1bf0   :  { %3481 = vmatprep.subr.bf16.mxu1 %v3734_v3 }
0x1cbd   :  { %v1332_v50 = vpop.f32.mrb[12].mxu1 }
0x1cbe   :  { %v1333_v51 = vadd.f32 %v1332_v50, %v1259_v23  ;;  %v3237_v52 = vpop.f32.mrb[13].mxu1 }
0x1cc0   :  { %v1336_v7 = vadd.f32 %v4015_v55, %v1333_v51 }
0x1cc2   :  { %3646 = vtanh.f32 %v1336_v7  ;;  %v2940_v54 = vmul.f32 -1.442695, %v1336_v7 }
0x1cc4   :  { %3648 = vpow2.f32 %v2940_v54 }
0x1ccc   :  { %v3647_v53 = vpop.eup %3646 }
0x1ccd   :  { %1346 = vrot.lane.b32.xlu0 %v3647_v53, %s3737_s13 }
0x1cce   :  { %v3649_v56 = vpop.eup %3648 }
0x1ccf   :  { %v1340_v57 = vadd.f32 1.0, %v3649_v56 }
0x1cd1   :  { %3650 = vrcp.f32 %v1340_v57 }
0x1cdb   :  { %v3651_v58 = vpop.eup %3650 }
0x1cdc   :  { %v1344_v61 = vmul.f32 %v3651_v58, %v4020_v10 }
0x1d3f   :  { %v1347_v59 = vpop.permute.xlu0 %1346 }
0x1d40   :  { %v1349_v60 = vmul.f32 %v3651_v58, %v1347_v59 }
0x1d42   :  { %1351 = vrot.lane.b32.xlu1 %v1349_v60, %s3738_s4 }
0x1db4   :  { %v1352_v62 = vpop.permute.xlu1 %1351 }
0x1db5   :  { %v4087_v63 = vadd.f32 %v1352_v62, %v1344_v61 }
0x1db7   :  { %3652 = vtanh.f32 %v4087_v63 }
0x1dc1   :  { %v3653_v0 = vpop.eup %3652 }
0x1dc2   :  { %1357 = vrot.lane.b32.xlu1 %v3653_v0, %s3737_s13 }
0x1e34   :  { %v1358_v1 = vpop.permute.xlu1 %1357 }
0x1e35   :  { %v1360_v2 = vmul.f32 %v3651_v58, %v1358_v1 }
0x1e37   :  { %1362 = vrot.lane.b32.xlu0 %v1360_v2, %s3738_s4 }
0x1ea9   :  { %v1363_v5 = vpop.permute.xlu0 %1362 }
0x1eaa   :  { %3247 = vmatmul.mubr.msk.f32.vlgmr.msra.gmra.mrb[12].mxu0 %vm57_vm1, %v1363_v5  ;;  %3258 = vmatmul.mubr.msk.f32.vlgmr.msra.gmra.mrb[14].mxu1 %vm57_vm1, %v1363_v5 }
0x1eab   :  { %3480 = vmatpush3.bf16.msra.mxu0 %v3986_v45  ;;  %3264 = vmatprep.mubr.msk.f32.mxu0 %vm3735_vm0, %v3736_v6 }
0x1eac   :  { %3487 = vmatprep.subr.bf16.mxu0 %v3734_v3  ;;  %3483 = vmatpush3.bf16.msra.mxu1 %v4032_v14 }
0x1ead   :  { %3484 = vmatprep.subr.bf16.mxu1 %v3734_v3  ;;  %3275 = vmatprep.mubr.msk.f32.mxu1 %vm3735_vm0, %v3736_v6 }
0x1eb0   :  { %3486 = vmatpush3.bf16.msra.mxu1 %v4038_v16 }
0x1eb1   :  { %3493 = vmatprep.subr.bf16.mxu1 %v3734_v3 }
0x1f7d   :  { %v1432_v8 = vpop.f32.mrb[12].mxu0  ;;  %v1535_v10 = vpop.f32.mrb[14].mxu1 }
0x1f7e   :  { %v4105_v11 = vadd.f32 %v4060_v21, %v1432_v8  ;;  %v3248_v12 = vpop.f32.mrb[13].mxu0  ;;  %v3259_v13 = vpop.f32.mrb[15].mxu1 }
0x1f80   :  { %v1436_v15 = vsel %vm1159_vm4, %v4105_v11, -inf }
0x1f81   :  { %1437 = vmax.xlane.f32.xlu1 %v1436_v15 }
0x200e   :  { %v1438_v17 = vpop.xlane.xlu1 %1437 }
0x200f   :  { %vm1439_vm9 = vcmp.eq.f32.partialorder %v4105_v11, %v1438_v17 }
0x2010   :  { %v1440_v18 = vsel %vm1439_vm9, %v3997_v49, 16 }
0x2011   :  { %v1441_v19 = vsel %vm1159_vm4, %v1440_v18, 2147483647 }
0x2012   :  { %v1443_v20 = vshra.s32 %v1441_v19, 16  ;;  %v1442_v23 = vand.u32 65535, %v1441_v19 }
0x2014   :  { %v1445_v22 = vcvt.s32.f32 %v1443_v20  ;;  %v1444_v26 = vcvt.s32.f32 %v1442_v23  ;;  %v3742_v23 = vmov 3  }
0x2016   :  { %1446 = vmin.xlane.f32.xlu0 %v1445_v22 }
0x20a3   :  { %v1447_v25 = vpop.xlane.xlu0 %1446 }
0x20a4   :  { %vm1448_vm10 = vcmp.eq.f32.partialorder %v1445_v22, %v1447_v25  ;;  %v1453_v29 = vcvt.f32.s32 %v1447_v25 }
0x20a5   :  { %v1449_v27 = vsel %vm1448_vm10, %v1444_v26, inf  ;;  %v1736_v26 = vstv %s1735_s30 }
0x20a6   :  { %1450 = vmin.xlane.f32.xlu0 %v1449_v27  ;;  %v1454_v32 = vshll.u32 %v1453_v29, 16  ;;  %vm1737_vm5 = vcmp.eq.s32.totalorder %v1736_v26, 1 }
0x2133   :  { %v1451_v31 = vpop.xlane.xlu0 %1450 }
0x2134   :  { %v1452_v33 = vcvt.f32.s32 %v1451_v31 }
0x2136   :  { %v1455_v35 = vadd.s32 %v1454_v32, %v1452_v33 }
0x2138   :  { %v1456_v36 = vcvt.s32.f32 %v1455_v35  ;;  %v1462_v37 = vsel %vm1461_vm11, %v3963_v9, %v1455_v35  ;;  %vm2884_vm11 = vcmask 31744  }
0x2139   :  { %1464 = vperm.xlu1 %3568, %v1462_v37  }
0x213a   :  { %v4114_v39 = vsel %vm2880_vm13, %v2879_v38, %v1456_v36 }
0x213d   :  { %3569 = vset.pattern.permute.xlu1 %v3742_v23 }
0x21b8   :  { %v1465_v40 = vpop.permute.xlu1 %1464 }
0x21b9   :  { %vm1466_vm14 = vcmp.eq.s32.totalorder %v3997_v49, %v1465_v40 }
0x21ba   :  { %v2943_v42 = vsel %vm1466_vm14, 1.0, %v3736_v6 }
0x21bb   :  { %3265 = vmatmul.mubr.msk.f32.vlgmr.msra.gmra.mrb[14].mxu0 %vm973_vm2, %v2943_v42 }
0x21bc   :  { %3489 = vmatpush3.bf16.msra.mxu0 %v3975_v41  ;;  %3286 = vmatprep.mubr.msk.f32.mxu0 %vm3735_vm0, %v3736_v6 }
0x21bd   :  { %3490 = vmatprep.subr.bf16.mxu0 %v3734_v3 }
0x21c0   :  { %3492 = vmatpush3.bf16.msra.mxu0 %v3989_v46 }
0x21c1   :  { %3496 = vmatprep.subr.bf16.mxu0 %v3734_v3 }
0x228e   :  { %v1608_v43 = vpop.f32.mrb[14].mxu0 }
0x228f   :  { %v1609_v44 = vadd.f32 %v1608_v43, %v1535_v10  ;;  %v3266_v47 = vpop.f32.mrb[15].mxu0 }
0x2291   :  { %v1612_v48 = vadd.f32 %v4015_v55, %v1609_v44 }
0x2293   :  { %3654 = vtanh.f32 %v1612_v48  ;;  %v2946_v50 = vmul.f32 -1.442695, %v1612_v48 }
0x2295   :  { %3656 = vpow2.f32 %v2946_v50 }
0x229d   :  { %v3655_v4 = vpop.eup %3654 }
0x229e   :  { %1622 = vrot.lane.b32.xlu0 %v3655_v4, %s3737_s13 }
0x229f   :  { %v3657_v51 = vpop.eup %3656 }
0x22a0   :  { %v1616_v52 = vadd.f32 1.0, %v3657_v51 }
0x22a2   :  { %3658 = vrcp.f32 %v1616_v52 }
0x22ac   :  { %v3659_v7 = vpop.eup %3658 }
0x22ad   :  { %v1620_v56 = vmul.f32 %v3659_v7, %v4087_v63 }
0x2310   :  { %v1623_v53 = vpop.permute.xlu0 %1622 }
0x2311   :  { %v1625_v54 = vmul.f32 %v3659_v7, %v1623_v53 }
0x2313   :  { %1627 = vrot.lane.b32.xlu1 %v1625_v54, %s3738_s4 }
0x2385   :  { %v1628_v57 = vpop.permute.xlu1 %1627 }
0x2386   :  { %v4129_v58 = vadd.f32 %v1628_v57, %v1620_v56 }
0x2388   :  { %3660 = vtanh.f32 %v4129_v58 }
0x2392   :  { %v3661_v59 = vpop.eup %3660 }
0x2393   :  { %1633 = vrot.lane.b32.xlu1 %v3661_v59, %s3737_s13 }
0x2405   :  { %v1634_v60 = vpop.permute.xlu1 %1633 }
0x2406   :  { %v1636_v61 = vmul.f32 %v3659_v7, %v1634_v60 }
0x2408   :  { %1638 = vrot.lane.b32.xlu0 %v1636_v61, %s3738_s4 }
0x247a   :  { %v1639_v62 = vpop.permute.xlu0 %1638 }
0x247b   :  { %3276 = vmatmul.mubr.msk.f32.vlgmr.msra.gmra.mrb[16].mxu1 %vm57_vm1, %v1639_v62  ;;  %3287 = vmatmul.mubr.msk.f32.vlgmr.msra.gmra.mrb[16].mxu0 %vm57_vm1, %v1639_v62 }
0x247c   :  { %3495 = vmatpush3.bf16.msra.mxu1 %v3986_v45  ;;  %3293 = vmatprep.mubr.msk.f32.mxu1 %vm3735_vm0, %v3736_v6 }
0x247d   :  { %3502 = vmatprep.subr.bf16.mxu1 %v3734_v3  ;;  %3498 = vmatpush3.bf16.msra.mxu0 %v4032_v14 }
0x247e   :  { %3499 = vmatprep.subr.bf16.mxu0 %v3734_v3  ;;  %3304 = vmatprep.mubr.msk.f32.mxu0 %vm3735_vm0, %v3736_v6 }
0x2481   :  { %3501 = vmatpush3.bf16.msra.mxu0 %v4038_v16 }
0x2482   :  { %3508 = vmatprep.subr.bf16.mxu0 %v3734_v3 }
0x254e   :  { %v1708_v63 = vpop.f32.mrb[16].mxu1  ;;  %v1811_v0 = vpop.f32.mrb[16].mxu0 }
0x254f   :  { %v4147_v1 = vadd.f32 %v4060_v21, %v1708_v63  ;;  %v3277_v2 = vpop.f32.mrb[17].mxu1  ;;  %v3288_v5 = vpop.f32.mrb[17].mxu0 }
0x2551   :  { %v1712_v8 = vsel %vm1159_vm4, %v4147_v1, -inf }
0x2552   :  { %1713 = vmax.xlane.f32.xlu1 %v1712_v8 }
0x25df   :  { %v1714_v10 = vpop.xlane.xlu1 %1713 }
0x25e0   :  { %vm1715_vm15 = vcmp.eq.f32.partialorder %v4147_v1, %v1714_v10 }
0x25e1   :  { %v1716_v12 = vsel %vm1715_vm15, %v3997_v49, 16 }
0x25e2   :  { %v1717_v13 = vsel %vm1159_vm4, %v1716_v12, 2147483647 }
0x25e3   :  { %v1719_v15 = vshra.s32 %v1717_v13, 16  ;;  %v1718_v18 = vand.u32 65535, %v1717_v13 }
0x25e5   :  { %v1721_v17 = vcvt.s32.f32 %v1719_v15  ;;  %v1720_v20 = vcvt.s32.f32 %v1718_v18 }
0x25e7   :  { %1722 = vmin.xlane.f32.xlu0 %v1721_v17 }
0x2674   :  { %v1723_v19 = vpop.xlane.xlu0 %1722 }
0x2675   :  { %vm1724_vm3 = vcmp.eq.f32.partialorder %v1721_v17, %v1723_v19  ;;  %v1729_v25 = vcvt.f32.s32 %v1723_v19  ;;  %v3743_v17 = vmov 4   ;;  %v2012_v19 = vstv %s2011_s14 }
0x2676   :  { %v1725_v22 = vsel %vm1724_vm3, %v1720_v20, inf  ;;  %vm2013_vm10 = vcmp.eq.s32.totalorder %v2012_v19, 1  ;;  %vm2886_vm3 = vcmask 39936  }
0x2677   :  { %1726 = vmin.xlane.f32.xlu0 %v1725_v22  ;;  %v1730_v28 = vshll.u32 %v1729_v25, 16 }
0x2704   :  { %v1727_v27 = vpop.xlane.xlu0 %1726 }
0x2705   :  { %v1728_v29 = vcvt.f32.s32 %v1727_v27 }
0x2707   :  { %v1731_v30 = vadd.s32 %v1730_v28, %v1728_v29 }
0x2709   :  { %v1732_v31 = vcvt.s32.f32 %v1731_v30  ;;  %v1738_v32 = vsel %vm1737_vm5, %v3963_v9, %v1731_v30 }
0x270a   :  { %1740 = vperm.xlu1 %3569, %v1738_v32  }
0x270b   :  { %v4156_v33 = vsel %vm2882_vm6, %v4114_v39, %v1732_v31 }
0x270e   :  { %3570 = vset.pattern.permute.xlu1 %v3743_v17 }
0x2789   :  { %v1741_v34 = vpop.permute.xlu1 %1740 }
0x278a   :  { %vm1742_vm7 = vcmp.eq.s32.totalorder %v3997_v49, %v1741_v34 }
0x278b   :  { %v2949_v35 = vsel %vm1742_vm7, 1.0, %v3736_v6 }
0x278c   :  { %3294 = vmatmul.mubr.msk.f32.vlgmr.msra.gmra.mrb[18].mxu1 %vm973_vm2, %v2949_v35 }
0x278d   :  { %3504 = vmatpush3.bf16.msra.mxu1 %v3975_v41  ;;  %3315 = vmatprep.mubr.msk.f32.mxu1 %vm3735_vm0, %v3736_v6 }
0x278e   :  { %3505 = vmatprep.subr.bf16.mxu1 %v3734_v3 }
0x2791   :  { %3507 = vmatpush3.bf16.msra.mxu1 %v3989_v46 }
0x2792   :  { %3511 = vmatprep.subr.bf16.mxu1 %v3734_v3 }
0x285f   :  { %v1884_v36 = vpop.f32.mrb[18].mxu1 }
0x2860   :  { %v1885_v37 = vadd.f32 %v1884_v36, %v1811_v0  ;;  %v3295_v38 = vpop.f32.mrb[19].mxu1 }
0x2862   :  { %v1888_v39 = vadd.f32 %v4015_v55, %v1885_v37 }
0x2864   :  { %3662 = vtanh.f32 %v1888_v39  ;;  %v2952_v42 = vmul.f32 -1.442695, %v1888_v39 }
0x2866   :  { %3664 = vpow2.f32 %v2952_v42 }
0x286e   :  { %v3663_v40 = vpop.eup %3662 }
0x286f   :  { %1898 = vrot.lane.b32.xlu0 %v3663_v40, %s3737_s13 }
0x2870   :  { %v3665_v43 = vpop.eup %3664 }
0x2871   :  { %v1892_v44 = vadd.f32 1.0, %v3665_v43 }
0x2873   :  { %3666 = vrcp.f32 %v1892_v44 }
0x287d   :  { %v3667_v47 = vpop.eup %3666 }
0x287e   :  { %v1896_v50 = vmul.f32 %v3667_v47, %v4129_v58 }
0x28e1   :  { %v1899_v48 = vpop.permute.xlu0 %1898 }
0x28e2   :  { %v1901_v4 = vmul.f32 %v3667_v47, %v1899_v48 }
0x28e4   :  { %1903 = vrot.lane.b32.xlu1 %v1901_v4, %s3738_s4 }
0x2956   :  { %v1904_v51 = vpop.permute.xlu1 %1903 }
0x2957   :  { %v4171_v52 = vadd.f32 %v1904_v51, %v1896_v50 }
0x2959   :  { %3668 = vtanh.f32 %v4171_v52 }
0x2963   :  { %v3669_v7 = vpop.eup %3668 }
0x2964   :  { %1909 = vrot.lane.b32.xlu1 %v3669_v7, %s3737_s13 }
0x29d6   :  { %v1910_v53 = vpop.permute.xlu1 %1909 }
0x29d7   :  { %v1912_v54 = vmul.f32 %v3667_v47, %v1910_v53 }
0x29d9   :  { %1914 = vrot.lane.b32.xlu0 %v1912_v54, %s3738_s4 }
0x2a4b   :  { %v1915_v56 = vpop.permute.xlu0 %1914 }
0x2a4c   :  { %3305 = vmatmul.mubr.msk.f32.vlgmr.msra.gmra.mrb[18].mxu0 %vm57_vm1, %v1915_v56  ;;  %3316 = vmatmul.mubr.msk.f32.vlgmr.msra.gmra.mrb[20].mxu1 %vm57_vm1, %v1915_v56 }
0x2a4d   :  { %3510 = vmatpush3.bf16.msra.mxu0 %v3986_v45  ;;  %3322 = vmatprep.mubr.msk.f32.mxu0 %vm3735_vm0, %v3736_v6 }
0x2a4e   :  { %3517 = vmatprep.subr.bf16.mxu0 %v3734_v3  ;;  %3513 = vmatpush3.bf16.msra.mxu1 %v4032_v14 }
0x2a4f   :  { %3514 = vmatprep.subr.bf16.mxu1 %v3734_v3  ;;  %3333 = vmatprep.mubr.msk.f32.mxu1 %vm3735_vm0, %v3736_v6 }
0x2a52   :  { %3516 = vmatpush3.bf16.msra.mxu1 %v4038_v16 }
0x2a53   :  { %3523 = vmatprep.subr.bf16.mxu1 %v3734_v3 }
0x2b1f   :  { %v1984_v57 = vpop.f32.mrb[18].mxu0  ;;  %v2087_v58 = vpop.f32.mrb[20].mxu1 }
0x2b20   :  { %v4189_v59 = vadd.f32 %v4060_v21, %v1984_v57  ;;  %v3306_v60 = vpop.f32.mrb[19].mxu0  ;;  %v3317_v61 = vpop.f32.mrb[21].mxu1 }
0x2b22   :  { %v1988_v62 = vsel %vm1159_vm4, %v4189_v59, -inf }
0x2b23   :  { %1989 = vmax.xlane.f32.xlu1 %v1988_v62 }
0x2bb0   :  { %v1990_v63 = vpop.xlane.xlu1 %1989 }
0x2bb1   :  { %vm1991_vm8 = vcmp.eq.f32.partialorder %v4189_v59, %v1990_v63 }
0x2bb2   :  { %v1992_v0 = vsel %vm1991_vm8, %v3997_v49, 16  ;;  %vm2888_vm8 = vcmask 48128  }
0x2bb3   :  { %v1993_v2 = vsel %vm1159_vm4, %v1992_v0, 2147483647 }
0x2bb4   :  { %v1995_v5 = vshra.s32 %v1993_v2, 16  ;;  %v1994_v10 = vand.u32 65535, %v1993_v2 }
0x2bb6   :  { %v1997_v8 = vcvt.s32.f32 %v1995_v5  ;;  %v1996_v13 = vcvt.s32.f32 %v1994_v10  ;;  %v3744_v10 = vmov 5  }
0x2bb8   :  { %1998 = vmin.xlane.f32.xlu0 %v1997_v8 }
0x2c45   :  { %v1999_v12 = vpop.xlane.xlu0 %1998 }
0x2c46   :  { %vm2000_vm9 = vcmp.eq.f32.partialorder %v1997_v8, %v1999_v12  ;;  %v2005_v18 = vcvt.f32.s32 %v1999_v12 }
0x2c47   :  { %v2001_v15 = vsel %vm2000_vm9, %v1996_v13, inf  ;;  %v2288_v13 = vstv %s2287_s16 }
0x2c48   :  { %2002 = vmin.xlane.f32.xlu0 %v2001_v15  ;;  %v2006_v22 = vshll.u32 %v2005_v18, 16  ;;  %vm2289_vm15 = vcmp.eq.s32.totalorder %v2288_v13, 1 }
0x2cd5   :  { %v2003_v20 = vpop.xlane.xlu0 %2002 }
0x2cd6   :  { %v2004_v23 = vcvt.f32.s32 %v2003_v20 }
0x2cd8   :  { %v2007_v25 = vadd.s32 %v2006_v22, %v2004_v23 }
0x2cda   :  { %v2008_v26 = vcvt.s32.f32 %v2007_v25  ;;  %v2014_v27 = vsel %vm2013_vm10, %v3963_v9, %v2007_v25 }
0x2cdb   :  { %2016 = vperm.xlu1 %3570, %v2014_v27  }
0x2cdc   :  { %v4198_v28 = vsel %vm2884_vm11, %v4156_v33, %v2008_v26 }
0x2cdf   :  { %3571 = vset.pattern.permute.xlu1 %v3744_v10 }
0x2d5a   :  { %v2017_v29 = vpop.permute.xlu1 %2016 }
0x2d5b   :  { %vm2018_vm12 = vcmp.eq.s32.totalorder %v3997_v49, %v2017_v29 }
0x2d5c   :  { %v2955_v30 = vsel %vm2018_vm12, 1.0, %v3736_v6  ;;  %vm2869_vm12 = vcmask 523264  }
0x2d5d   :  { %3323 = vmatmul.mubr.msk.f32.vlgmr.msra.gmra.mrb[20].mxu0 %vm973_vm2, %v2955_v30 }
0x2d5e   :  { %3519 = vmatpush3.bf16.msra.mxu0 %v3975_v41  ;;  %3344 = vmatprep.mubr.msk.f32.mxu0 %vm3735_vm0, %v3736_v6 }
0x2d5f   :  { %3520 = vmatprep.subr.bf16.mxu0 %v3734_v3 }
0x2d62   :  { %3522 = vmatpush3.bf16.msra.mxu0 %v3989_v46 }
0x2d63   :  { %3526 = vmatprep.subr.bf16.mxu0 %v3734_v3 }
0x2e30   :  { %v2160_v31 = vpop.f32.mrb[20].mxu0 }
0x2e31   :  { %v2161_v32 = vadd.f32 %v2160_v31, %v2087_v58  ;;  %v3324_v33 = vpop.f32.mrb[21].mxu0 }
0x2e33   :  { %v2164_v34 = vadd.f32 %v4015_v55, %v2161_v32 }
0x2e35   :  { %3670 = vtanh.f32 %v2164_v34  ;;  %v2958_v36 = vmul.f32 -1.442695, %v2164_v34 }
0x2e37   :  { %3672 = vpow2.f32 %v2958_v36 }
0x2e3f   :  { %v3671_v35 = vpop.eup %3670 }
0x2e40   :  { %2174 = vrot.lane.b32.xlu0 %v3671_v35, %s3737_s13 }
0x2e41   :  { %v3673_v37 = vpop.eup %3672 }
0x2e42   :  { %v2168_v38 = vadd.f32 1.0, %v3673_v37 }
0x2e44   :  { %3674 = vrcp.f32 %v2168_v38 }
0x2e4e   :  { %v3675_v39 = vpop.eup %3674 }
0x2e4f   :  { %v2172_v43 = vmul.f32 %v3675_v39, %v4171_v52 }
0x2eb2   :  { %v2175_v40 = vpop.permute.xlu0 %2174 }
0x2eb3   :  { %v2177_v42 = vmul.f32 %v3675_v39, %v2175_v40 }
0x2eb5   :  { %2179 = vrot.lane.b32.xlu1 %v2177_v42, %s3738_s4 }
0x2f27   :  { %v2180_v44 = vpop.permute.xlu1 %2179 }
0x2f28   :  { %v4213_v47 = vadd.f32 %v2180_v44, %v2172_v43 }
0x2f2a   :  { %3676 = vtanh.f32 %v4213_v47 }
0x2f34   :  { %v3677_v48 = vpop.eup %3676 }
0x2f35   :  { %2185 = vrot.lane.b32.xlu1 %v3677_v48, %s3737_s13 }
0x2fa7   :  { %v2186_v4 = vpop.permute.xlu1 %2185 }
0x2fa8   :  { %v2188_v50 = vmul.f32 %v3675_v39, %v2186_v4 }
0x2faa   :  { %2190 = vrot.lane.b32.xlu0 %v2188_v50, %s3738_s4 }
0x301c   :  { %v2191_v51 = vpop.permute.xlu0 %2190 }
0x301d   :  { %3334 = vmatmul.mubr.msk.f32.vlgmr.msra.gmra.mrb[22].mxu1 %vm57_vm1, %v2191_v51  ;;  %3345 = vmatmul.mubr.msk.f32.vlgmr.msra.gmra.mrb[22].mxu0 %vm57_vm1, %v2191_v51 }
0x301e   :  { %3525 = vmatpush3.bf16.msra.mxu1 %v3986_v45  ;;  %3351 = vmatprep.mubr.msk.f32.mxu1 %vm3735_vm0, %v3736_v6 }
0x301f   :  { %3532 = vmatprep.subr.bf16.mxu1 %v3734_v3  ;;  %3528 = vmatpush3.bf16.msra.mxu0 %v4032_v14 }
0x3020   :  { %3529 = vmatprep.subr.bf16.mxu0 %v3734_v3  ;;  %3362 = vmatprep.mubr.msk.f32.mxu0 %vm3735_vm0, %v3736_v6 }
0x3023   :  { %3531 = vmatpush3.bf16.msra.mxu0 %v4038_v16 }
0x3024   :  { %3538 = vmatprep.subr.bf16.mxu0 %v3734_v3 }
0x30f0   :  { %v2260_v52 = vpop.f32.mrb[22].mxu1  ;;  %v2363_v7 = vpop.f32.mrb[22].mxu0 }
0x30f1   :  { %v4231_v53 = vadd.f32 %v4060_v21, %v2260_v52  ;;  %v3335_v54 = vpop.f32.mrb[23].mxu1  ;;  %v3346_v56 = vpop.f32.mrb[23].mxu0 }
0x30f3   :  { %v2264_v57 = vsel %vm1159_vm4, %v4231_v53, -inf }
0x30f4   :  { %2265 = vmax.xlane.f32.xlu1 %v2264_v57  ;;  %v3745_v57 = vmov 6  }
0x30f5   :  { %3573 = vset.pattern.permute.xlu0 %v3745_v57 }
0x3181   :  { %v2266_v58 = vpop.xlane.xlu1 %2265 }
0x3182   :  { %vm2267_vm13 = vcmp.eq.f32.partialorder %v4231_v53, %v2266_v58 }
0x3183   :  { %v2268_v60 = vsel %vm2267_vm13, %v3997_v49, 16  ;;  %vm2871_vm13 = vcmask 654336  }
0x3184   :  { %v2269_v61 = vsel %vm1159_vm4, %v2268_v60, 2147483647  ;;  %v2564_v60 = vstv %s2563_s18 }
0x3185   :  { %v2271_v62 = vshra.s32 %v2269_v61, 16  ;;  %v2270_v0 = vand.u32 65535, %v2269_v61  ;;  %vm2565_vm7 = vcmp.eq.s32.totalorder %v2564_v60, 1 }
0x3187   :  { %v2273_v63 = vcvt.s32.f32 %v2271_v62  ;;  %v2272_v5 = vcvt.s32.f32 %v2270_v0 }
0x3189   :  { %2274 = vmin.xlane.f32.xlu0 %v2273_v63 }
0x3216   :  { %v2275_v2 = vpop.xlane.xlu0 %2274 }
0x3217   :  { %vm2276_vm14 = vcmp.eq.f32.partialorder %v2273_v63, %v2275_v2  ;;  %v2281_v12 = vcvt.f32.s32 %v2275_v2 }
0x3218   :  { %v2277_v8 = vsel %vm2276_vm14, %v2272_v5, inf  ;;  %v3694_v5 = vld [vmem:[%s4325_s1] sm:$0xf]  ;;  %s3746_s1 = smov 16   ;;  %vm2873_vm14 = vcmask 785408  }
0x3219   :  { %2278 = vmin.xlane.f32.xlu0 %v2277_v8  ;;  %v2282_v17 = vshll.u32 %v2281_v12, 16 }
0x32a6   :  { %v2279_v15 = vpop.xlane.xlu0 %2278 }
0x32a7   :  { %v2280_v18 = vcvt.f32.s32 %v2279_v15 }
0x32a9   :  { %v2283_v19 = vadd.s32 %v2282_v17, %v2280_v18 }
0x32ab   :  { %v2284_v20 = vcvt.s32.f32 %v2283_v19  ;;  %v2290_v22 = vsel %vm2289_vm15, %v3963_v9, %v2283_v19  ;;  %vm2875_vm15 = vcmask 916480  }
0x32ac   :  { %2292 = vperm.xlu1 %3571, %v2290_v22  }
0x32ad   :  { %v4240_v23 = vsel %vm2886_vm3, %v4198_v28, %v2284_v20 }
0x32b0   :  { %3572 = vset.pattern.permute.xlu1 %v3745_v57 }
0x332b   :  { %v2293_v25 = vpop.permute.xlu1 %2292 }
0x332c   :  { %vm2294_vm5 = vcmp.eq.s32.totalorder %v3997_v49, %v2293_v25 }
0x332d   :  { %v2961_v26 = vsel %vm2294_vm5, 1.0, %v3736_v6 }
0x332e   :  { %3352 = vmatmul.mubr.msk.f32.vlgmr.msra.gmra.mrb[24].mxu1 %vm973_vm2, %v2961_v26 }
0x332f   :  { %3534 = vmatpush3.bf16.msra.mxu1 %v3975_v41  ;;  %3373 = vmatprep.mubr.msk.f32.mxu1 %vm3735_vm0, %v3736_v6 }
0x3330   :  { %3535 = vmatprep.subr.bf16.mxu1 %v3734_v3 }
0x3333   :  { %3537 = vmatpush3.bf16.msra.mxu1 %v3989_v46 }
0x3334   :  { %3541 = vmatprep.subr.bf16.mxu1 %v3734_v3 }
0x3401   :  { %v2436_v9 = vpop.f32.mrb[24].mxu1 }
0x3402   :  { %v2437_v27 = vadd.f32 %v2436_v9, %v2363_v7  ;;  %v3353_v28 = vpop.f32.mrb[25].mxu1 }
0x3404   :  { %v2440_v29 = vadd.f32 %v4015_v55, %v2437_v27 }
0x3406   :  { %3678 = vtanh.f32 %v2440_v29  ;;  %v2964_v31 = vmul.f32 -1.442695, %v2440_v29 }
0x3408   :  { %3680 = vpow2.f32 %v2964_v31 }
0x3410   :  { %v3679_v30 = vpop.eup %3678 }
0x3411   :  { %2450 = vrot.lane.b32.xlu0 %v3679_v30, %s3737_s13 }
0x3412   :  { %v3681_v41 = vpop.eup %3680 }
0x3413   :  { %v2444_v32 = vadd.f32 1.0, %v3681_v41 }
0x3415   :  { %3682 = vrcp.f32 %v2444_v32 }
0x341f   :  { %v3683_v33 = vpop.eup %3682 }
0x3420   :  { %v2448_v46 = vmul.f32 %v3683_v33, %v4213_v47 }
0x3483   :  { %v2451_v34 = vpop.permute.xlu0 %2450 }
0x3484   :  { %v2453_v35 = vmul.f32 %v3683_v33, %v2451_v34 }
0x3486   :  { %2455 = vrot.lane.b32.xlu1 %v2453_v35, %s3738_s4 }
0x34f8   :  { %v2456_v36 = vpop.permute.xlu1 %2455 }
0x34f9   :  { %v4255_v37 = vadd.f32 %v2456_v36, %v2448_v46 }
0x34fb   :  { %3684 = vtanh.f32 %v4255_v37 }
0x3505   :  { %v3685_v38 = vpop.eup %3684 }
0x3506   :  { %2461 = vrot.lane.b32.xlu1 %v3685_v38, %s3737_s13 }
0x3578   :  { %v2462_v39 = vpop.permute.xlu1 %2461 }
0x3579   :  { %v2464_v40 = vmul.f32 %v3683_v33, %v2462_v39 }
0x357b   :  { %2466 = vrot.lane.b32.xlu0 %v2464_v40, %s3738_s4 }
0x35ed   :  { %v2467_v42 = vpop.permute.xlu0 %2466 }
0x35ee   :  { %3363 = vmatmul.mubr.msk.f32.vlgmr.msra.gmra.mrb[24].mxu0 %vm57_vm1, %v2467_v42  ;;  %3374 = vmatmul.mubr.msk.f32.vlgmr.msra.gmra.mrb[26].mxu1 %vm57_vm1, %v2467_v42 }
0x35ef   :  { %3540 = vmatpush3.bf16.msra.mxu0 %v3986_v45  ;;  %3380 = vmatprep.mubr.msk.f32.mxu0 %vm3735_vm0, %v3736_v6 }
0x35f0   :  { %3543 = vmatpush3.bf16.msra.mxu1 %v4032_v14  ;;  %3391 = vmatprep.mubr.msk.f32.mxu1 %vm3735_vm0, %v3736_v6 }
0x35f1   :  { %3544 = vmatprep.subr.bf16.mxu1 %v3734_v3 }
0x35f4   :  { %3546 = vmatpush3.bf16.msra.mxu1 %v4038_v16 }
0x36c1   :  { %v2536_v43 = vpop.f32.mrb[24].mxu0  ;;  %v2639_v44 = vpop.f32.mrb[26].mxu1 }
0x36c2   :  { %v4271_v47 = vadd.f32 %v4060_v21, %v2536_v43  ;;  %v3364_v48 = vpop.f32.mrb[25].mxu0  ;;  %v3375_v4 = vpop.f32.mrb[27].mxu1 }
0x36c4   :  { %v2540_v45 = vsel %vm1159_vm4, %v4271_v47, -inf }
0x36c5   :  { %2541 = vmax.xlane.f32.xlu1 %v2540_v45 }
0x3752   :  { %v2542_v50 = vpop.xlane.xlu1 %2541 }
0x3753   :  { %vm2543_vm6 = vcmp.eq.f32.partialorder %v4271_v47, %v2542_v50 }
0x3754   :  { %v2544_v14 = vsel %vm2543_vm6, %v3997_v49, 16 }
0x3755   :  { %v2545_v3 = vsel %vm1159_vm4, %v2544_v14, 2147483647 }
0x3756   :  { %v2547_v51 = vshra.s32 %v2545_v3, 16  ;;  %v2546_v52 = vand.u32 65535, %v2545_v3 }
0x3758   :  { %v2549_v16 = vcvt.s32.f32 %v2547_v51  ;;  %v2548_v54 = vcvt.s32.f32 %v2546_v52 }
0x375a   :  { %2550 = vmin.xlane.f32.xlu0 %v2549_v16 }
0x37e7   :  { %v2551_v7 = vpop.xlane.xlu0 %2550 }
0x37e8   :  { %vm2552_vm0 = vcmp.eq.f32.partialorder %v2549_v16, %v2551_v7  ;;  %v2557_v58 = vcvt.f32.s32 %v2551_v7 }
0x37e9   :  { %v2553_v56 = vsel %vm2552_vm0, %v2548_v54, inf }
0x37ea   :  { %2554 = vmin.xlane.f32.xlu0 %v2553_v56  ;;  %v2558_v62 = vshll.u32 %v2557_v58, 16 }
0x3877   :  { %v2555_v61 = vpop.xlane.xlu0 %2554 }
0x3878   :  { %v2556_v63 = vcvt.f32.s32 %v2555_v61 }
0x387a   :  { %v2559_v0 = vadd.s32 %v2558_v62, %v2556_v63 }
0x387c   :  { %v2560_v2 = vcvt.s32.f32 %v2559_v0  ;;  %v2566_v8 = vsel %vm2565_vm7, %v3694_v5, %v2559_v0 }
0x387d   :  { %2568 = vperm.xlu1 %3572, %v2566_v8  }
0x387e   :  { %v4282_v10 = vsel %vm2888_vm8, %v4240_v23, %v2560_v2 }
0x38fc   :  { %v2569_v12 = vpop.permute.xlu1 %2568 }
0x38fd   :  { %vm2570_vm9 = vcmp.eq.s32.totalorder %v3997_v49, %v2569_v12 }
0x38fe   :  { %v2967_v13 = vsel %vm2570_vm9, 1.0, %v3736_v6 }
0x38ff   :  { %3381 = vmatmul.mubr.msk.f32.vlgmr.msra.gmra.mrb[26].mxu0 %vm973_vm2, %v2967_v13 }
0x39d2   :  { %v2712_v15 = vpop.f32.mrb[26].mxu0 }
0x39d3   :  { %v2713_v17 = vadd.f32 %v2712_v15, %v2639_v44  ;;  %v3382_v18 = vpop.f32.mrb[27].mxu0 }
0x39d5   :  { %v2716_v19 = vadd.f32 %v4015_v55, %v2713_v17 }
0x39d7   :  { %3686 = vtanh.f32 %v2716_v19  ;;  %v2970_v22 = vmul.f32 -1.442695, %v2716_v19 }
0x39d9   :  { %3688 = vpow2.f32 %v2970_v22 }
0x39e1   :  { %v3687_v20 = vpop.eup %3686 }
0x39e2   :  { %2726 = vrot.lane.b32.xlu0 %v3687_v20, %s3737_s13 }
0x39e3   :  { %v3689_v23 = vpop.eup %3688 }
0x39e4   :  { %v2720_v25 = vadd.f32 1.0, %v3689_v23 }
0x39e6   :  { %3690 = vrcp.f32 %v2720_v25 }
0x39f0   :  { %v3691_v26 = vpop.eup %3690 }
0x39f1   :  { %v2724_v6 = vmul.f32 %v3691_v26, %v4255_v37 }
0x3a54   :  { %v2727_v9 = vpop.permute.xlu0 %2726 }
0x3a55   :  { %v2729_v27 = vmul.f32 %v3691_v26, %v2727_v9 }
0x3a57   :  { %2731 = vrot.lane.b32.xlu1 %v2729_v27, %s3738_s4 }
0x3ac9   :  { %v2732_v28 = vpop.permute.xlu1 %2731 }
0x3aca   :  { %v2734_v29 = vadd.f32 %v2732_v28, %v2724_v6 }
0x3acc   :  { %3692 = vtanh.f32 %v2734_v29 }
0x3ad6   :  { %v3693_v55 = vpop.eup %3692 }
0x3ad7   :  { %2737 = vrot.lane.b32.xlu1 %v3693_v55, %s3737_s13 }
0x3b49   :  { %v2738_v30 = vpop.permute.xlu1 %2737 }
0x3b4a   :  { %v2740_v31 = vmul.f32 %v3691_v26, %v2738_v30 }
0x3b4c   :  { %2742 = vrot.lane.b32.xlu0 %v2740_v31, %s3738_s4 }
0x3bbe   :  { %v2743_v41 = vpop.permute.xlu0 %2742 }
0x3bbf   :  { %3392 = vmatmul.mubr.msk.f32.vlgmr.msra.gmra.mrb[28].mxu1 %vm57_vm1, %v2743_v41 }
0x3c92   :  { %v2812_v32 = vpop.f32.mrb[28].mxu1 }
0x3c93   :  { %v2813_v33 = vadd.f32 %v4060_v21, %v2812_v32  ;;  %v3393_v34 = vpop.f32.mrb[29].mxu1 }
0x3c95   :  { %v2816_v35 = vsel %vm1159_vm4, %v2813_v33, -inf }
0x3c96   :  { %2817 = vmax.xlane.f32.xlu1 %v2816_v35 }
0x3ca7   :  { %2838 = vrot.lane.b32.xlu1 %v4063_v24, %s3746_s1 }
0x3cab   :  { %2846 = vrot.lane.b32.xlu1 %v4147_v1, %s3747_s5 }
0x3caf   :  { %2850 = vrot.lane.b32.xlu1 %v4189_v59, %s3737_s13  ;;  %s3750_s13 = smov 112  }
0x3cb3   :  { %2858 = vrot.lane.b32.xlu1 %v4271_v47, %s3748_s6 }
0x3d23   :  { %v2818_v46 = vpop.xlane.xlu1 %2817 }
0x3d24   :  { %vm2819_vm10 = vcmp.eq.f32.partialorder %v2813_v33, %v2818_v46 }
0x3d25   :  { %v2820_v21 = vsel %vm2819_vm10, %v3997_v49, 16 }
0x3d26   :  { %v2821_v36 = vsel %vm1159_vm4, %v2820_v21, 2147483647  ;;  %vm2867_vm4 = vcmask 392192  }
0x3d27   :  { %v2823_v37 = vshra.s32 %v2821_v36, 16  ;;  %v2822_v24 = vand.u32 65535, %v2821_v36  ;;  %v2839_v49 = vpop.permute.xlu1 %2838 }
0x3d28   :  { %v2865_v42 = vsel %vm973_vm2, 0.0, %v2839_v49  ;;  %vm2892_vm2 = vcmask 60416  }
0x3d29   :  { %v2825_v38 = vcvt.s32.f32 %v2823_v37  ;;  %v2824_v59 = vcvt.s32.f32 %v2822_v24 }
0x3d2b   :  { %2826 = vmin.xlane.f32.xlu0 %v2825_v38  ;;  %v2847_v43 = vpop.permute.xlu1 %2846 }
0x3d41   :  { %2842 = vrot.lane.b32.xlu0 %v4105_v11, %s3738_s4  ;;  %s3751_s4 = smov [#allocation5]  }
0x3d42   :  { %s2902_s21 = sshll.u32 %s3751_s4, 4  ;;  %s2903_s21 = int_to_ptr.vmem [resolvable:$true] %s2902_s21 }
0x3d43   :  { %s3707_s24 = scalar_lea.vmem %s2903_s21, 64  ;;  %p3712_p12 = scmp.lt.s32.totalorder %s2903_s21, %s2903_s21 }
0x3d44   :  { %p3708_p11 = scmp.ne.s32.totalorder %s2903_s21, %s3707_s24  ;;  %p3713_p13 = scmp.lt.s32.totalorder %s3707_s24, %s3707_s24 }
0x3d45   :  { %2854 = vrot.lane.b32.xlu0 %v4231_v53, %s3749_s7  ;;  %v2851_v53 = vpop.permute.xlu1 %2850 }
0x3d46   :  { %p3714_p0 = por %p3713_p13, %p3712_p12 }
0x3d48   :  { %p3715_p1 = pnand %p3714_p0, %p3708_p11 }
0x3d49   :  { %v2859_v51 = vpop.permute.xlu1 %2858 }
0x3db8   :  { %v2827_v1 = vpop.xlane.xlu0 %2826 }
0x3db9   :  { %vm2828_vm11 = vcmp.eq.f32.partialorder %v2825_v38, %v2827_v1  ;;  %v2833_v48 = vcvt.f32.s32 %v2827_v1 }
0x3dba   :  { %v2829_v39 = vsel %vm2828_vm11, %v2824_v59, inf }
0x3dbb   :  { %2830 = vmin.xlane.f32.xlu0 %v2829_v39  ;;  %v2834_v50 = vshll.u32 %v2833_v48, 16 }
0x3dbc   :  { %v2843_v40 = vpop.permute.xlu0 %2842 }
0x3dbd   :  { %v2866_v44 = vsel %vm57_vm1, %v2865_v42, %v2843_v40  ;;  %vm2890_vm1 = vcmask 56320  }
0x3dbe   :  { %v2868_v11 = vsel %vm2867_vm4, %v2866_v44, %v2847_v43 }
0x3dbf   :  { %v2870_v4 = vsel %vm2869_vm12, %v2868_v11, %v2851_v53 }
0x3dc0   :  { %v2855_v47 = vpop.permute.xlu0 %2854 }
0x3dc1   :  { %v2872_v14 = vsel %vm2871_vm13, %v2870_v4, %v2855_v47 }
0x3dc2   :  { %v2874_v7 = vsel %vm2873_vm14, %v2872_v14, %v2859_v51 }
0x3dd1   :  { %2862 = vrot.lane.b32.xlu0 %v2813_v33, %s3750_s13 }
0x3e48   :  { %v2831_v45 = vpop.xlane.xlu0 %2830 }
0x3e49   :  { %v2832_v3 = vcvt.f32.s32 %v2831_v45 }
0x3e4b   :  { %v2835_v16 = vadd.s32 %v2834_v50, %v2832_v3 }
0x3e4c   :  { %v2863_v52 = vpop.permute.xlu0 %2862 }
0x3e4d   :  { %v2836_v54 = vcvt.s32.f32 %v2835_v16  ;;  %v2876_v56 = vsel %vm2875_vm15, %v2874_v7, %v2863_v52 }
0x3e4e   :  { %2877 = vst [vmem:[%s4334_s10] sm:$0xf] %v2876_v56 }
0x3e4f   :  { %v2891_v57 = vsel %vm2890_vm1, %v4282_v10, %v2836_v54 }
0x3e50   :  { %2893 = vst.msk [vmem:[#allocation5] sm:$0xf] %vm2892_vm2, %v2891_v57 }
0x3e51   :  { %3718 = shalt.err (!%p3715_p1)
}
0x3e52   :  { %s3719_s26 = scalar_lea.hbm %s4335_s11, 64 }
0x3e53   :  { %p3720_p2 = scmp.ne.s32.totalorder %s4335_s11, %s3719_s26  ;;  %p3723_p3 = scmp.lt.u32.totalorder %s3719_s26, %s4335_s11 }
0x3e55   :  { %p3725_p4 = pnand %p3723_p3, %p3720_p2 }
0x3e57   :  { %3728 = shalt.err (!%p3725_p4)
}
0x3e58   :  { %2905 = dma.vmem_to_hbm [thread:$0]  %s2903_s21, 64, %s4335_s11, [#allocation3]  }
0x3e59   :  { %3731 = dma.done.wait [#allocation3], 64  }
0x3e5a   :  { %3732 = vsyncadd [#allocation3], 4294967232 }
0x3e5b   :  { %2911 = vsyncpa [#allocation3], 1 }
0x3e5c   :  { %2912 = vsyncpa [#allocation4], 1 }

</bundles_post_ra>
